<compile_context>
chip_gen: v6e
topology: v6e:2x2x1
jax: 0.10.0
libtpu: 0.0.40
codegen_flags: <defaults>
</compile_context>

<pallas_src>
import functools

import numpy as np
import jax
import jax.numpy as jnp
from jax.experimental import pallas as pl
from jax.experimental.pallas import tpu as pltpu


# --------------------------------------------------------------------------
# Fused conv (+ folded BN affine) (+ leaky relu) Pallas kernel
# --------------------------------------------------------------------------
def _conv_kernel(x_ref, w_ref, scale_ref, bias_ref, o_ref, acc_ref, *,
                 TH, W, K, slope):
    """One grid step computes TH output rows (M = TH*W output pixels).

    x_ref    : (1, Hp*W, K*Cin)  flattened padded + width-folded image (bf16)
    w_ref    : (K, K*Cin, Cout)  dw-folded conv weights (bf16)
    scale_ref: (1, Cout)         folded BN scale (f32)
    bias_ref : (1, Cout)         folded BN bias  (f32)
    o_ref    : (1, M, Cout)      output pixels (bf16)
    acc_ref  : (M, Cout)         f32 VMEM accumulator scratch
    """
    t = pl.program_id(1)
    M = TH * W
    for dh in range(K):
        base = t * M + dh * W
        if W % 8 == 0:
            base = pl.multiple_of(base, 8)      # sublane-aligned window start
        win = x_ref[0, pl.ds(base, M), :]       # contiguous (M, K*Cin) slice
        part = jnp.dot(win, w_ref[dh], preferred_element_type=jnp.float32)
        if dh == 0:
            acc_ref[...] = part
        else:
            acc_ref[...] += part
    y = acc_ref[...] * scale_ref[...] + bias_ref[...]
    y = jnp.where(y >= 0.0, y, slope * y)       # leaky relu / relu
    o_ref[0] = y.astype(o_ref.dtype)


def _pick_tile_rows(H, W, Cout):
    """Largest divisor TH of H such that the f32 accumulator (TH*W, Cout) stays
    <= ~128 KiB of VMEM scratch and the store tile stays sublane-aligned."""
    acc_budget = 128 * 1024
    m_cap = max(W, min(512, acc_budget // (4 * max(Cout, 8))))
    th = 1
    for cand in range(1, H + 1):
        if H % cand != 0:
            continue
        m = cand * W
        if m <= m_cap and (m % 8 == 0 or cand == H):
            th = cand
    if (th * W) % 8 != 0 and th != H:           # safety: keep stores aligned
        th = H
    return th


@functools.lru_cache(maxsize=None)
def _build_conv(N, H, W, Cin, Cout, K, slope):
    TH = _pick_tile_rows(H, W, Cout)
    M = TH * W
    n_tiles = H // TH
    Rin = (H + K - 1) * W               # padded rows, flattened with width W
    Cf = K * Cin                        # dw taps folded into the contraction
    kernel = functools.partial(_conv_kernel, TH=TH, W=W, K=K, slope=slope)
    return pl.pallas_call(
        kernel,
        out_shape=jax.ShapeDtypeStruct((N, H * W, Cout), jnp.bfloat16),
        grid_spec=pltpu.PrefetchScalarGridSpec(
            num_scalar_prefetch=0,
            grid=(N, n_tiles),
            in_specs=[
                pl.BlockSpec((1, Rin, Cf), lambda n, t: (n, 0, 0)),
                pl.BlockSpec((K, Cf, Cout), lambda n, t: (0, 0, 0)),
                pl.BlockSpec((1, Cout), lambda n, t: (0, 0)),
                pl.BlockSpec((1, Cout), lambda n, t: (0, 0)),
            ],
            out_specs=pl.BlockSpec((1, M, Cout), lambda n, t: (n, t, 0)),
            scratch_shapes=[pltpu.VMEM((M, Cout), jnp.float32)],
        ),
        compiler_params=pltpu.CompilerParams(
            dimension_semantics=("parallel", "parallel"),
            vmem_limit_bytes=48 * 1024 * 1024,
        ),
    )


def conv_apply(x, p):
    """x: (N, H, W, Cin) -> (N, H, W, Cout) bf16; conv + folded BN + activation."""
    pad, K = p["pad"], p["k"]
    assert 2 * pad == K - 1, "only 'same' convolutions are supported"
    N, H, W, Cin = x.shape
    Cout = p["w"].shape[-1]
    assert p["w"].shape == (K, K * Cin, Cout)
    # Pad in bf16 (halves the DMA bytes), then fold the dw taps into the
    # channel axis (im2col over width only).
    xp = jnp.pad(x.astype(jnp.bfloat16),
                 ((0, 0), (pad, pad), (pad, pad), (0, 0)), mode=p["padmode"])
    xw = jnp.concatenate([xp[:, :, k:k + W, :] for k in range(K)], axis=-1)
    xf = xw.reshape(N, (H + K - 1) * W, K * Cin)
    call = _build_conv(N, H, W, Cin, Cout, K, float(p["slope"]))
    yf = call(xf, p["w"], p["scale"], p["bias"])            # (N, H*W, Cout) bf16
    return yf.reshape(N, H, W, Cout)


# --------------------------------------------------------------------------
# Glue ops (plain JAX)
# --------------------------------------------------------------------------
def _cubic_weight(t, a=-0.75):
    t = np.abs(t)
    return np.where(
        t <= 1.0,
        (a + 2.0) * t ** 3 - (a + 3.0) * t ** 2 + 1.0,
        np.where(t < 2.0, a * t ** 3 - 5.0 * a * t ** 2 + 8.0 * a * t - 4.0 * a, 0.0),
    )


@functools.lru_cache(maxsize=None)
def _bicubic_matrix(n_in, scale):
    """Dense (n_in*scale, n_in) PyTorch-bicubic (align_corners=False) matrix."""
    n_out = n_in * scale
    M = np.zeros((n_out, n_in), np.float64)
    for j in range(n_out):
        src = (j + 0.5) / scale - 0.5
        i0 = int(np.floor(src))
        f = src - i0
        for t in range(-1, 3):
            w = _cubic_weight(t - f)
            idx = min(max(i0 + t, 0), n_in - 1)
            M[j, idx] += w
    return jnp.asarray(M, jnp.float32)


def bicubic_upsample(x, scale):
    N, H, W, C = x.shape
    Mh = _bicubic_matrix(H, scale)
    Mw = _bicubic_matrix(W, scale)
    x = jnp.einsum("ph,nhwc->npwc", Mh, x.astype(jnp.float32))
    x = jnp.einsum("qw,npwc->npqc", Mw, x)
    return x


def maxpool2(x):
    N, H, W, C = x.shape
    return x.reshape(N, H // 2, 2, W // 2, 2, C).max(axis=(2, 4))


def _f32(a):
    return a.astype(jnp.float32)


# --------------------------------------------------------------------------
# Parameter initialization (deterministic, synthetic)
# --------------------------------------------------------------------------
def _fold_weight(w4, cin_s, cout_s):
    """(K, K, cin, cout) f32 -> zero-padded, dw-folded (K, K*cin_s, cout_s) bf16."""
    K, _, cin, cout = w4.shape
    w4 = jnp.pad(w4, ((0, 0), (0, 0), (0, cin_s - cin), (0, cout_s - cout)))
    return w4.reshape(K, K * cin_s, cout_s).astype(jnp.bfloat16)


def _convblock_params(key, cin, cout, ksize, cin_stored=None, cout_stored=None):
    """Conv2d(reflect) + BatchNorm2d(eval, folded) + LeakyReLU(0.2)."""
    cin_s = cin if cin_stored is None else cin_stored
    cout_s = cout if cout_stored is None else cout_stored
    k1, k2, k3, k4 = jax.random.split(key, 4)
    fan_in = cin * ksize * ksize
    w4 = (jax.random.normal(k1, (ksize, ksize, cin, cout), jnp.float32)
          * np.sqrt(2.0 / fan_in))
    b_conv = jax.random.normal(k2, (cout,), jnp.float32) * 0.01
    gamma = 1.0 + 0.1 * jax.random.normal(k3, (cout,), jnp.float32)
    beta = 0.1 * jax.random.normal(k4, (cout,), jnp.float32)
    running_mean = jnp.zeros((cout,), jnp.float32)
    running_var = jnp.ones((cout,), jnp.float32)
    s = gamma / jnp.sqrt(running_var + 1e-5)
    bias = (b_conv - running_mean) * s + beta
    # Padded output channels produce exactly 0 (zero weights, zero bias), so
    # carrying them through later layers (zero weight rows) is a no-op.
    s = jnp.pad(s, (0, cout_s - cout), constant_values=1.0)
    bias = jnp.pad(bias, (0, cout_s - cout))
    return dict(w=_fold_weight(w4, cin_s, cout_s),
                scale=s.reshape(1, cout_s), bias=bias.reshape(1, cout_s),
                k=ksize, pad=ksize // 2, padmode="reflect", slope=0.2)


def _vggconv_params(key, cin, cout):
    """Conv2d(zero pad) + bias + ReLU (synthetic He-init VGG19-shaped weights)."""
    k1, k2 = jax.random.split(key)
    fan_in = cin * 9
    w4 = (jax.random.normal(k1, (3, 3, cin, cout), jnp.float32)
          * np.sqrt(2.0 / fan_in))
    b = jax.random.normal(k2, (cout,), jnp.float32) * 0.01
    return dict(w=_fold_weight(w4, cin, cout),
                scale=jnp.ones((1, cout), jnp.float32), bias=b.reshape(1, cout),
                k=3, pad=1, padmode="constant", slope=0.0)


def _decode_params(key, cin, cout, ksize):
    keys = jax.random.split(key, 6)
    d = {"c1": _convblock_params(keys[0], cin, cout, ksize)}
    for i in range(1, 6):
        d[f"c{i + 1}"] = _convblock_params(keys[i], cout, cout, ksize)
    return d


def init_params(key):
    vgg_cfg = [("conv1_1", 3, 64), ("conv1_2", 64, 64),
               ("conv2_1", 64, 128), ("conv2_2", 128, 128),
               ("conv3_1", 128, 256), ("conv3_2", 256, 256),
               ("conv3_3", 256, 256), ("conv3_4", 256, 256)]
    keys = iter(jax.random.split(key, 32))
    p = {"vgg": {n: _vggconv_params(next(keys), ci, co) for n, ci, co in vgg_cfg}}
    for n in ["p0_1", "p0_2", "p0_3", "p0_4"]:
        p[n] = _convblock_params(next(keys), 256, 256, 5)
    p["d4"] = _decode_params(next(keys), 256, 256, 5)
    p["d3"] = _decode_params(next(keys), 256, 256, 5)
    p["d2"] = _decode_params(next(keys), 256, 128, 5)
    p["d1"] = _decode_params(next(keys), 128, 64, 5)
    for n, ci, co in [("e1", 64, 64), ("e2", 64, 64), ("e3", 64, 64),
                      ("e4", 64, 64), ("e5", 64, 64)]:
        p[n] = _convblock_params(next(keys), ci, co, 3)
    # Narrow tail: pad Cout to a full 128-lane store; sliced back to 3 at the end.
    p["e6"] = _convblock_params(next(keys), 64, 32, 3, cout_stored=128)
    p["e7"] = _convblock_params(next(keys), 32, 16, 3, cin_stored=128, cout_stored=128)
    p["end"] = _convblock_params(next(keys), 16, 3, 3, cin_stored=128, cout_stored=128)
    return p


# --------------------------------------------------------------------------
# Model forward (mirrors SR_v3.forward)
# --------------------------------------------------------------------------
def vgg_apply(x, vp, stage):
    """stage 1 -> relu_1_2, 2 -> relu_2_2, 3 -> relu_3_4 (shared VGG weights)."""
    x = conv_apply(x, vp["conv1_1"])
    x = conv_apply(x, vp["conv1_2"])
    if stage == 1:
        return x
    x = maxpool2(x)
    x = conv_apply(x, vp["conv2_1"])
    x = conv_apply(x, vp["conv2_2"])
    if stage == 2:
        return x
    x = maxpool2(x)
    x = conv_apply(x, vp["conv3_1"])
    x = conv_apply(x, vp["conv3_2"])
    x = conv_apply(x, vp["conv3_3"])
    x = conv_apply(x, vp["conv3_4"])
    return x


def decode_apply(x, dp):
    x = bicubic_upsample(x, 2)
    for c in ["c1", "c2", "c3", "c4", "c5", "c6"]:
        x = conv_apply(x, dp[c])
    return x


def sr_v3_forward(params, x):
    lr_img = x
    lr2x = bicubic_upsample(x, 2)
    lr4x = bicubic_upsample(x, 4)

    vgg3_lr = vgg_apply(lr_img, params["vgg"], 3)
    y = vgg3_lr
    y = conv_apply(y, params["p0_1"])
    y = conv_apply(y, params["p0_2"])
    y = conv_apply(y, params["p0_3"])
    y = conv_apply(y, params["p0_4"])
    y = _f32(y) + _f32(vgg3_lr)            # == y + self.vgg_3(lr_img)
    x4 = y

    y = decode_apply(y, params["d4"])
    y = _f32(y) + _f32(vgg_apply(lr2x, params["vgg"], 3))
    x3 = y

    y = decode_apply(y, params["d3"])
    y = _f32(y) + _f32(vgg_apply(lr4x, params["vgg"], 3))
    x2 = y

    y = decode_apply(y, params["d2"])
    y = _f32(y) + _f32(vgg_apply(lr4x, params["vgg"], 2))
    x1 = y

    y = decode_apply(y, params["d1"])
    y = _f32(y) + _f32(vgg_apply(lr4x, params["vgg"], 1))
    x0 = y

    for n in ["e1", "e2", "e3", "e4", "e5", "e6", "e7", "end"]:
        y = conv_apply(y, params[n])
    y = _f32(y[..., :3]) + lr4x            # drop the lane-padding channels
    return y, (x0, x1, x2, x3, x4)


# --------------------------------------------------------------------------
if __name__ == "__main__":
    key = jax.random.PRNGKey(0)
    pkey, xkey = jax.random.split(key)
    params = init_params(pkey)

    # NHWC input (equivalent to PyTorch NCHW [2, 3, 16, 16])
    x = jax.random.normal(xkey, (2, 16, 16, 3), jnp.float32)

    out, feats = sr_v3_forward(params, x)
    jax.block_until_ready(out)
    for f in feats:
        jax.block_until_ready(f)

    assert out.shape == (2, 64, 64, 3)
    assert feats[4].shape == (2, 4, 4, 256)      # x4
    assert feats[3].shape == (2, 8, 8, 256)      # x3
    assert feats[2].shape == (2, 16, 16, 256)    # x2
    assert feats[1].shape == (2, 32, 32, 128)    # x1
    assert feats[0].shape == (2, 64, 64, 64)     # x0
    print("KERNEL_OK")
</pallas_src>

<mosaic_0001>
module attributes {stable_mosaic.version = 11 : i64} {
  func.func @_conv_kernel(%arg0: i32, %arg1: i32, %arg2: memref<1x288x9xbf16, #tpu.memory_space<vmem>>, %arg3: memref<3x9x64xbf16, #tpu.memory_space<vmem>>, %arg4: memref<1x64xf32, #tpu.memory_space<vmem>>, %arg5: memref<1x64xf32, #tpu.memory_space<vmem>>, %arg6: memref<1x256x64xbf16, #tpu.memory_space<vmem>>, %arg7: memref<256x64xf32, #tpu.memory_space<vmem>>) attributes {dimension_semantics = [#tpu.dimension_semantics<parallel>, #tpu.dimension_semantics<parallel>], iteration_bounds = array<i64: 2, 1>, scalar_prefetch = 0 : i64, scratch_operands = 1 : i64, tpu.core_type = #tpu.core_type<tc>, window_params = [{transform_indices = @transform_0, window_bounds = array<i64: 1, 288, 9>}, {pipeline_mode = #tpu.pipeline_mode<synchronous>, transform_indices = @transform_1, window_bounds = array<i64: 3, 9, 64>}, {pipeline_mode = #tpu.pipeline_mode<synchronous>, transform_indices = @transform_2, window_bounds = array<i64: 1, 64>}, {pipeline_mode = #tpu.pipeline_mode<synchronous>, transform_indices = @transform_3, window_bounds = array<i64: 1, 64>}, {transform_indices = @transform_4, window_bounds = array<i64: 1, 256, 64>}]} {
    %c256_i32 = arith.constant 256 : i32
    %0 = arith.muli %arg1, %c256_i32 : i32
    %c0_i32 = arith.constant 0 : i32
    %1 = arith.addi %0, %c0_i32 : i32
    %2 = tpu.assume_multiple %1, 8 : i32
    %c0 = arith.constant 0 : index
    %3 = arith.index_cast %2 : i32 to index
    %c0_0 = arith.constant 0 : index
    %4 = vector.load %arg2[%c0, %3, %c0_0] : memref<1x288x9xbf16, #tpu.memory_space<vmem>>, vector<1x256x9xbf16>
    %5 = vector.shape_cast %4 : vector<1x256x9xbf16> to vector<256x9xbf16>
    %c0_1 = arith.constant 0 : index
    %c0_2 = arith.constant 0 : index
    %c0_3 = arith.constant 0 : index
    %6 = vector.load %arg3[%c0_1, %c0_2, %c0_3] : memref<3x9x64xbf16, #tpu.memory_space<vmem>>, vector<1x9x64xbf16>
    %7 = vector.shape_cast %6 : vector<1x9x64xbf16> to vector<9x64xbf16>
    %cst = arith.constant dense<0.000000e+00> : vector<256x64xf32>
    %8 = tpu.matmul %5, %7, %cst {dimension_numbers = #tpu.dot_dimension_numbers<[1], [0], [0], [1], [0, 0, 1, 1], [], []>} : vector<256x9xbf16>, vector<9x64xbf16>, vector<256x64xf32> -> vector<256x64xf32>
    %c0_4 = arith.constant 0 : index
    %c0_5 = arith.constant 0 : index
    %9 = vector.load %arg7[%c0_4, %c0_5] : memref<256x64xf32, #tpu.memory_space<vmem>>, vector<256x64xf32>
    tpu.vector_store %arg7[%c0_4, %c0_5], %8 {strides = array<i32>} : memref<256x64xf32, #tpu.memory_space<vmem>>, vector<256x64xf32>,
    %c256_i32_6 = arith.constant 256 : i32
    %10 = arith.muli %arg1, %c256_i32_6 : i32
    %c16_i32 = arith.constant 16 : i32
    %11 = arith.addi %10, %c16_i32 : i32
    %12 = tpu.assume_multiple %11, 8 : i32
    %c0_7 = arith.constant 0 : index
    %13 = arith.index_cast %12 : i32 to index
    %c0_8 = arith.constant 0 : index
    %14 = vector.load %arg2[%c0_7, %13, %c0_8] : memref<1x288x9xbf16, #tpu.memory_space<vmem>>, vector<1x256x9xbf16>
    %15 = vector.shape_cast %14 : vector<1x256x9xbf16> to vector<256x9xbf16>
    %c1 = arith.constant 1 : index
    %c0_9 = arith.constant 0 : index
    %c0_10 = arith.constant 0 : index
    %16 = vector.load %arg3[%c1, %c0_9, %c0_10] : memref<3x9x64xbf16, #tpu.memory_space<vmem>>, vector<1x9x64xbf16>
    %17 = vector.shape_cast %16 : vector<1x9x64xbf16> to vector<9x64xbf16>
    %cst_11 = arith.constant dense<0.000000e+00> : vector<256x64xf32>
    %18 = tpu.matmul %15, %17, %cst_11 {dimension_numbers = #tpu.dot_dimension_numbers<[1], [0], [0], [1], [0, 0, 1, 1], [], []>} : vector<256x9xbf16>, vector<9x64xbf16>, vector<256x64xf32> -> vector<256x64xf32>
    %c0_12 = arith.constant 0 : index
    %c0_13 = arith.constant 0 : index
    %19 = vector.load %arg7[%c0_12, %c0_13] : memref<256x64xf32, #tpu.memory_space<vmem>>, vector<256x64xf32>
    %20 = arith.addf %19, %18 : vector<256x64xf32>
    %c0_14 = arith.constant 0 : index
    %c0_15 = arith.constant 0 : index
    %21 = vector.load %arg7[%c0_14, %c0_15] : memref<256x64xf32, #tpu.memory_space<vmem>>, vector<256x64xf32>
    tpu.vector_store %arg7[%c0_14, %c0_15], %20 {strides = array<i32>} : memref<256x64xf32, #tpu.memory_space<vmem>>, vector<256x64xf32>,
    %c256_i32_16 = arith.constant 256 : i32
    %22 = arith.muli %arg1, %c256_i32_16 : i32
    %c32_i32 = arith.constant 32 : i32
    %23 = arith.addi %22, %c32_i32 : i32
    %24 = tpu.assume_multiple %23, 8 : i32
    %c0_17 = arith.constant 0 : index
    %25 = arith.index_cast %24 : i32 to index
    %c0_18 = arith.constant 0 : index
    %26 = vector.load %arg2[%c0_17, %25, %c0_18] : memref<1x288x9xbf16, #tpu.memory_space<vmem>>, vector<1x256x9xbf16>
    %27 = vector.shape_cast %26 : vector<1x256x9xbf16> to vector<256x9xbf16>
    %c2 = arith.constant 2 : index
    %c0_19 = arith.constant 0 : index
    %c0_20 = arith.constant 0 : index
    %28 = vector.load %arg3[%c2, %c0_19, %c0_20] : memref<3x9x64xbf16, #tpu.memory_space<vmem>>, vector<1x9x64xbf16>
    %29 = vector.shape_cast %28 : vector<1x9x64xbf16> to vector<9x64xbf16>
    %cst_21 = arith.constant dense<0.000000e+00> : vector<256x64xf32>
    %30 = tpu.matmul %27, %29, %cst_21 {dimension_numbers = #tpu.dot_dimension_numbers<[1], [0], [0], [1], [0, 0, 1, 1], [], []>} : vector<256x9xbf16>, vector<9x64xbf16>, vector<256x64xf32> -> vector<256x64xf32>
    %c0_22 = arith.constant 0 : index
    %c0_23 = arith.constant 0 : index
    %31 = vector.load %arg7[%c0_22, %c0_23] : memref<256x64xf32, #tpu.memory_space<vmem>>, vector<256x64xf32>
    %32 = arith.addf %31, %30 : vector<256x64xf32>
    %c0_24 = arith.constant 0 : index
    %c0_25 = arith.constant 0 : index
    %33 = vector.load %arg7[%c0_24, %c0_25] : memref<256x64xf32, #tpu.memory_space<vmem>>, vector<256x64xf32>
    tpu.vector_store %arg7[%c0_24, %c0_25], %32 {strides = array<i32>} : memref<256x64xf32, #tpu.memory_space<vmem>>, vector<256x64xf32>,
    %c0_26 = arith.constant 0 : index
    %c0_27 = arith.constant 0 : index
    %34 = vector.load %arg7[%c0_26, %c0_27] : memref<256x64xf32, #tpu.memory_space<vmem>>, vector<256x64xf32>
    %c0_28 = arith.constant 0 : index
    %c0_29 = arith.constant 0 : index
    %35 = vector.load %arg4[%c0_28, %c0_29] : memref<1x64xf32, #tpu.memory_space<vmem>>, vector<1x64xf32>
    %36 = vector.broadcast %35 : vector<1x64xf32> to vector<256x64xf32>
    %37 = arith.mulf %34, %36 : vector<256x64xf32>
    %c0_30 = arith.constant 0 : index
    %c0_31 = arith.constant 0 : index
    %38 = vector.load %arg5[%c0_30, %c0_31] : memref<1x64xf32, #tpu.memory_space<vmem>>, vector<1x64xf32>
    %39 = vector.broadcast %38 : vector<1x64xf32> to vector<256x64xf32>
    %40 = arith.addf %37, %39 : vector<256x64xf32>
    %cst_32 = arith.constant 0.000000e+00 : f32
    %41 = vector.broadcast %cst_32 : f32 to vector<256x64xf32>
    %42 = arith.cmpf oge, %40, %41 : vector<256x64xf32>
    %cst_33 = arith.constant 0.000000e+00 : f32
    %43 = vector.broadcast %cst_33 : f32 to vector<256x64xf32>
    %44 = arith.mulf %43, %40 : vector<256x64xf32>
    %45 = arith.select %42, %40, %44 : vector<256x64xi1>, vector<256x64xf32>
    %46 = arith.truncf %45 : vector<256x64xf32> to vector<256x64xbf16>
    %c0_34 = arith.constant 0 : index
    %c0_35 = arith.constant 0 : index
    %c0_36 = arith.constant 0 : index
    %47 = vector.load %arg6[%c0_34, %c0_35, %c0_36] : memref<1x256x64xbf16, #tpu.memory_space<vmem>>, vector<1x256x64xbf16>
    %48 = vector.shape_cast %47 : vector<1x256x64xbf16> to vector<256x64xbf16>
    %49 = vector.shape_cast %46 : vector<256x64xbf16> to vector<1x256x64xbf16>
    tpu.vector_store %arg6[%c0_34, %c0_35, %c0_36], %49 {strides = array<i32>} : memref<1x256x64xbf16, #tpu.memory_space<vmem>>, vector<1x256x64xbf16>,
    return
  }
  func.func @transform_0(%arg0: i32, %arg1: i32) -> (i32, i32, i32) {
    %c0_i32 = arith.constant 0 : i32
    %c0_i32_0 = arith.constant 0 : i32
    %c0_i32_1 = arith.constant 0 : i32
    return %arg0, %c0_i32, %c0_i32_0 : i32, i32, i32
  }
  func.func @transform_1(%arg0: i32, %arg1: i32) -> (i32, i32, i32) {
    %c0_i32 = arith.constant 0 : i32
    %c0_i32_0 = arith.constant 0 : i32
    %c0_i32_1 = arith.constant 0 : i32
    %c0_i32_2 = arith.constant 0 : i32
    return %c0_i32, %c0_i32_0, %c0_i32_1 : i32, i32, i32
  }
  func.func @transform_2(%arg0: i32, %arg1: i32) -> (i32, i32) {
    %c0_i32 = arith.constant 0 : i32
    %c0_i32_0 = arith.constant 0 : i32
    %c0_i32_1 = arith.constant 0 : i32
    return %c0_i32, %c0_i32_0 : i32, i32
  }
  func.func @transform_3(%arg0: i32, %arg1: i32) -> (i32, i32) {
    %c0_i32 = arith.constant 0 : i32
    %c0_i32_0 = arith.constant 0 : i32
    %c0_i32_1 = arith.constant 0 : i32
    return %c0_i32, %c0_i32_0 : i32, i32
  }
  func.func @transform_4(%arg0: i32, %arg1: i32) -> (i32, i32, i32) {
    %c0_i32 = arith.constant 0 : i32
    %c0_i32_0 = arith.constant 0 : i32
    return %arg0, %arg1, %c0_i32 : i32, i32, i32
  }
}

</mosaic_0001>

<bundles_post_ra>
// kernel: tpu_custom_call.1
= control target key start
LH: loop header
LB: loop body
LE: loop exit
PB: predicated region body
PF: predicated region fallthrough
CT: control target
= control target key end

     0   :  { %s2442_s15 = smov 0   ;;  %s2444_s16 = smov 0   ;;  %s2876_s0 = inlined_call_operand.vmem [shape: bf16[2,288,9], index: 0, kind: input, shape index: {}]   ;;  %s2877_s1 = inlined_call_operand.vmem [shape: bf16[3,9,64], index: 1, kind: input, shape index: {}]   ;;  %s2878_s2 = inlined_call_operand.vmem [shape: f32[1,64], index: 2, kind: input, shape index: {}]   ;;  %s2879_s3 = inlined_call_operand.vmem [shape: f32[1,64], index: 3, kind: input, shape index: {}]   ;;  %s2880_s4 = inlined_call_operand.vmem [shape: bf16[2,256,64], index: 4, kind: output, shape index: {}]  }
   0x1   :  { %s2446_s17 = smov 0  }
   0x2 LB: > { %s26_s18 = sadd.s32 1, %s2410_s16  ;;  %p1920_p0 = scmp.ge.s32.totalorder %s2414_s17, 1  ;;  %s2414_s17 = sphi %s2446_s17, %s14_s17   ;;  %s2410_s16 = sphi %s2444_s16, %s2882_s16   ;;  %s2406_s15 = sphi %s2442_s15, %s2881_s15  }
   0x3   : > { %p28_p1 = scmp.ge.s32.totalorder %s26_s18, 2  ;;  %p176_p2 = scmp.lt.s32.totalorder %s2414_s17, 3 }
   0x5   : > { %s2884_s18 = smov (%p28_p1, %s26_s18), 0  ;;  %p177_p3 = pnand %p1920_p0, %p176_p2 }
   0x6   : > { %p206_p4 = scmp.lt.s32.totalorder (!%p177_p3), %s2406_s15, 1 }
   0x7   : > { %180 = sbr.rel (%p177_p3) target bundleno = 344 (0x158), region = 36 }
   0xc   : > { %v2341_v0 = vld [vmem:[%s2877_s1] sm:$0x1f]   ;;  %vm395_vm0 = vcmask 1043456   ;;  %vm396_vm1 = vcmask 1044480   ;;  %v2416_v1 = vmov 65535   ;;  %s2886_s15 = smov (!%p206_p4, %s2406_s15), 1 }
   0xd   : > { %v397_v2 = vsel %vm395_vm0, 4294967295, %v2416_v1  ;;  %v2343_v4 = vld [vmem:[%s2877_s1 + $0x8] sm:$0x1f]   ;;  %v2349_v6 = vld [vmem:[%s2877_s1 + $0x10] sm:$0x1f]   ;;  %s2315_s25 = smul.u32 144, %s2886_s15 }
   0xe   : > { %v398_v3 = vsel %vm396_vm1, %v397_v2, 0  ;;  %vm346_vm2 = vcmask 72704   ;;  %vm563_vm3 = vcmask 523264   ;;  %s2127_s7 = sshll.u32 %s2886_s15, 7  ;;  %vm1796_vm5 = vcmask 519168  }
   0xf   : > { %v400_v5 = vand.u32 %v2341_v0, %v398_v3  ;;  %v770_v7 = vand.u32 %v2343_v4, %v398_v3  ;;  %v1203_v8 = vand.u32 %v2349_v6, %v398_v3  ;;  %s2475_s28 = scalar_lea.vmem %s2876_s0, %s2315_s25  ;;  %s2647_s10 = scalar_lea.vmem %s2880_s4, %s2127_s7 }
  0x10   : > { %v2342_v9 = vld [vmem:[%s2475_s28 + $0x40] sm:$0xff]   ;;  %v2344_v10 = vld [vmem:[%s2475_s28 + $0x48] sm:$0xff]   ;;  %v2347_v13 = vld [vmem:[%s2475_s28 + $0x50] sm:$0xff]  }
  0x11   : > { %2313 = vmatprep.subr.bf16.mxu1 %v400_v5  ;;  %2211 = vmatprep.subr.bf16.mxu0 %v400_v5  ;;  %v2345_v11 = vld [vmem:[%s2475_s28] sm:$0xff]   ;;  %v2346_v12 = vld [vmem:[%s2475_s28 + $0x8] sm:$0xff]   ;;  %v2350_v14 = vld [vmem:[%s2475_s28 + $0x10] sm:$0xff]  }
  0x12   : > { %2314 = vmatpush3.bf16.msra.mxu1 %v400_v5  ;;  %2212 = vmatpush3.bf16.msra.mxu0 %v400_v5  ;;  %v2348_v15 = vld [vmem:[%s2475_s28 + $0x58] sm:$0xff]   ;;  %v2352_v16 = vld [vmem:[%s2475_s28 + $0x60] sm:$0xff]   ;;  %v2353_v19 = vld [vmem:[%s2475_s28 + $0x68] sm:$0xff]  }
  0x13   : > { %2245 = vmatprep.subr.bf16.mxu1 %v770_v7  ;;  %2279 = vmatprep.subr.bf16.mxu0 %v1203_v8  ;;  %v2351_v17 = vld [vmem:[%s2475_s28 + $0x18] sm:$0xff]   ;;  %v2354_v18 = vld [vmem:[%s2475_s28 + $0x20] sm:$0xff]   ;;  %v2356_v20 = vld [vmem:[%s2475_s28 + $0x70] sm:$0xff]  }
  0x14   : > { %2229 = vmatprep.mubr.msk.bf16.mxu1 %vm346_vm2, %v2342_v9  ;;  %2213 = vmatprep.mubr.msk.bf16.mxu0 %vm346_vm2, %v2345_v11  ;;  %v2355_v21 = vld [vmem:[%s2475_s28 + $0x28] sm:$0xff]   ;;  %v2358_v22 = vld [vmem:[%s2475_s28 + $0x30] sm:$0xff]   ;;  %v2357_v23 = vld [vmem:[%s2475_s28 + $0x78] sm:$0xff]  }
  0x15   : > { %2230 = vmatmul.mubr.msk.bf16.vlgmr.msra.gmra.mxu1 %vm346_vm2, %v2344_v10  ;;  %2214 = vmatmul.mubr.msk.bf16.vlgmr.msra.gmra.mxu0 %vm346_vm2, %v2346_v12  ;;  %v2360_v24 = vld [vmem:[%s2475_s28 + $0x8] sm:$0xff]   ;;  %v2359_v25 = vld [vmem:[%s2475_s28 + $0x38] sm:$0xff]   ;;  %v2362_v26 = vld [vmem:[%s2475_s28 + $0x10] sm:$0xff]  }
  0x16   : > { %2246 = vmatpush3.bf16.msra.mxu1 %v770_v7  ;;  %2233 = vmatprep.mubr.msk.bf16.mxu1 %vm346_vm2, %v2347_v13  ;;  %v2361_v27 = vld [vmem:[%s2475_s28 + $0x10] sm:$0xff]   ;;  %v2364_v28 = vld [vmem:[%s2475_s28 + $0x18] sm:$0xff]   ;;  %v2366_v30 = vld [vmem:[%s2475_s28 + $0x20] sm:$0xff]  }
  0x17   : > { %2280 = vmatpush3.bf16.msra.mxu0 %v1203_v8  ;;  %2217 = vmatprep.mubr.msk.bf16.mxu0 %vm346_vm2, %v2350_v14  ;;  %v2363_v29 = vld [vmem:[%s2475_s28 + $0x18] sm:$0xff]   ;;  %v2365_v31 = vld [vmem:[%s2475_s28 + $0x20] sm:$0xff]   ;;  %v2368_v32 = vld [vmem:[%s2475_s28 + $0x28] sm:$0xff]  }
  0x18   : > { %v2367_v33 = vld [vmem:[%s2475_s28 + $0x28] sm:$0xff]   ;;  %v2370_v34 = vld [vmem:[%s2475_s28 + $0x30] sm:$0xff]   ;;  %v2372_v36 = vld [vmem:[%s2475_s28 + $0x38] sm:$0xff]  }
  0x19   : > { %v2369_v35 = vld [vmem:[%s2475_s28 + $0x30] sm:$0xff]   ;;  %v2371_v37 = vld [vmem:[%s2475_s28 + $0x38] sm:$0xff]   ;;  %v2374_v38 = vld [vmem:[%s2475_s28 + $0x40] sm:$0xff]  }
  0x1a   : > { %v2373_v39 = vld [vmem:[%s2475_s28 + $0x40] sm:$0xff]   ;;  %v2376_v40 = vld [vmem:[%s2475_s28 + $0x48] sm:$0xff]   ;;  %v2378_v42 = vld [vmem:[%s2475_s28 + $0x50] sm:$0xff]  }
  0x1b   : > { %v2375_v41 = vld [vmem:[%s2475_s28 + $0x48] sm:$0xff]   ;;  %v2377_v43 = vld [vmem:[%s2475_s28 + $0x50] sm:$0xff]   ;;  %v2380_v44 = vld [vmem:[%s2475_s28 + $0x58] sm:$0xff]  }
  0x1c   : > { %v2379_v45 = vld [vmem:[%s2475_s28 + $0x58] sm:$0xff]   ;;  %v2382_v46 = vld [vmem:[%s2475_s28 + $0x60] sm:$0xff]   ;;  %v2384_v48 = vld [vmem:[%s2475_s28 + $0x68] sm:$0xff]  }
  0x1d   : > { %2234 = vmatmul.mubr.msk.bf16.gmra.mxu1 %vm346_vm2, %v2348_v15  ;;  %2218 = vmatmul.mubr.msk.bf16.gmra.mxu0 %vm346_vm2, %v2351_v17  ;;  %v2381_v47 = vld [vmem:[%s2475_s28 + $0x60] sm:$0xff]   ;;  %v2383_v49 = vld [vmem:[%s2475_s28 + $0x68] sm:$0xff]   ;;  %v2386_v50 = vld [vmem:[%s2475_s28 + $0x70] sm:$0xff]  }
  0x1e   : > { %2237 = vmatprep.mubr.msk.bf16.mxu1 %vm346_vm2, %v2352_v16  ;;  %2221 = vmatprep.mubr.msk.bf16.mxu0 %vm346_vm2, %v2354_v18  ;;  %v2385_v51 = vld [vmem:[%s2475_s28 + $0x70] sm:$0xff]   ;;  %v2388_v52 = vld [vmem:[%s2475_s28 + $0x78] sm:$0xff]   ;;  %v2390_v54 = vld [vmem:[%s2475_s28 + $0x80] sm:$0xff]  }
  0x1f   : > { %v2387_v53 = vld [vmem:[%s2475_s28 + $0x78] sm:$0xff]   ;;  %v2389_v55 = vld [vmem:[%s2475_s28 + $0x80] sm:$0xff]   ;;  %v2391_v56 = vld [vmem:[%s2475_s28 + $0x88] sm:$0xff]  }
  0x25   : > { %2238 = vmatmul.mubr.msk.bf16.gmra.mxu1 %vm346_vm2, %v2353_v19  ;;  %2222 = vmatmul.mubr.msk.bf16.gmra.mxu0 %vm346_vm2, %v2355_v21 }
  0x26   : > { %2241 = vmatprep.mubr.msk.bf16.mxu1 %vm346_vm2, %v2356_v20  ;;  %2225 = vmatprep.mubr.msk.bf16.mxu0 %vm346_vm2, %v2358_v22 }
  0x2d   : > { %2242 = vmatmul.mubr.msk.bf16.gmra.mxu1 %vm346_vm2, %v2357_v23  ;;  %2226 = vmatmul.mubr.msk.bf16.gmra.mxu0 %vm346_vm2, %v2359_v25 }
  0x2e   : > { %2247 = vmatprep.mubr.msk.bf16.mxu1 %vm346_vm2, %v2360_v24  ;;  %2281 = vmatprep.mubr.msk.bf16.mxu0 %vm346_vm2, %v2362_v26 }
  0x35   : > { %2248 = vmatmul.mubr.msk.bf16.vlgmr.msra.gmra.mxu1 %vm346_vm2, %v2361_v27  ;;  %2282 = vmatmul.mubr.msk.bf16.vlgmr.msra.gmra.mxu0 %vm346_vm2, %v2363_v29 }
  0x36   : > { %2251 = vmatprep.mubr.msk.bf16.mxu1 %vm346_vm2, %v2364_v28  ;;  %2285 = vmatprep.mubr.msk.bf16.mxu0 %vm346_vm2, %v2366_v30 }
  0x3d   : > { %2252 = vmatmul.mubr.msk.bf16.gmra.mxu1 %vm346_vm2, %v2365_v31  ;;  %2286 = vmatmul.mubr.msk.bf16.gmra.mxu0 %vm346_vm2, %v2367_v33 }
  0x3e   : > { %2255 = vmatprep.mubr.msk.bf16.mxu1 %vm346_vm2, %v2368_v32  ;;  %2289 = vmatprep.mubr.msk.bf16.mxu0 %vm346_vm2, %v2370_v34 }
  0x45   : > { %2256 = vmatmul.mubr.msk.bf16.gmra.mxu1 %vm346_vm2, %v2369_v35  ;;  %2290 = vmatmul.mubr.msk.bf16.gmra.mxu0 %vm346_vm2, %v2371_v37 }
  0x46   : > { %2259 = vmatprep.mubr.msk.bf16.mxu1 %vm346_vm2, %v2372_v36  ;;  %2293 = vmatprep.mubr.msk.bf16.mxu0 %vm346_vm2, %v2374_v38 }
  0x4d   : > { %2260 = vmatmul.mubr.msk.bf16.gmra.mxu1 %vm346_vm2, %v2373_v39  ;;  %2294 = vmatmul.mubr.msk.bf16.gmra.mxu0 %vm346_vm2, %v2375_v41 }
  0x4e   : > { %2263 = vmatprep.mubr.msk.bf16.mxu1 %vm346_vm2, %v2376_v40  ;;  %2297 = vmatprep.mubr.msk.bf16.mxu0 %vm346_vm2, %v2378_v42 }
  0x55   : > { %2264 = vmatmul.mubr.msk.bf16.gmra.mxu1 %vm346_vm2, %v2377_v43  ;;  %2298 = vmatmul.mubr.msk.bf16.gmra.mxu0 %vm346_vm2, %v2379_v45 }
  0x56   : > { %2267 = vmatprep.mubr.msk.bf16.mxu1 %vm346_vm2, %v2380_v44  ;;  %2301 = vmatprep.mubr.msk.bf16.mxu0 %vm346_vm2, %v2382_v46 }
  0x5d   : > { %2268 = vmatmul.mubr.msk.bf16.gmra.mxu1 %vm346_vm2, %v2381_v47  ;;  %2302 = vmatmul.mubr.msk.bf16.gmra.mxu0 %vm346_vm2, %v2383_v49 }
  0x5e   : > { %2271 = vmatprep.mubr.msk.bf16.mxu1 %vm346_vm2, %v2384_v48  ;;  %2305 = vmatprep.mubr.msk.bf16.mxu0 %vm346_vm2, %v2386_v50 }
  0x65   : > { %2272 = vmatmul.mubr.msk.bf16.gmra.mxu1 %vm346_vm2, %v2385_v51  ;;  %2306 = vmatmul.mubr.msk.bf16.gmra.mxu0 %vm346_vm2, %v2387_v53 }
  0x66   : > { %2275 = vmatprep.mubr.msk.bf16.mxu1 %vm346_vm2, %v2388_v52  ;;  %2309 = vmatprep.mubr.msk.bf16.mxu0 %vm346_vm2, %v2390_v54 }
  0x6d   : > { %2276 = vmatmul.mubr.msk.bf16.gmra.mxu1 %vm346_vm2, %v2389_v55  ;;  %2310 = vmatmul.mubr.msk.bf16.gmra.mxu0 %vm346_vm2, %v2391_v56 }
  0xd5   : > { %v2231_v57 = vpop.f32.mrf.mxu1  ;;  %v2215_v59 = vpop.f32.mrf.mxu0 }
  0xd6   : > { %582 = vst.msk [vmem:[#allocation2 + $0x90] sm:$0xff] %vm563_vm3, %v2231_v57  ;;  %566 = vst.msk [vmem:[#allocation2 + $0x10] sm:$0xff] %vm563_vm3, %v2215_v59 }
  0xd7   : > { %v500_v58 = vpop.f32.mrf.mxu1  ;;  %v436_v61 = vpop.f32.mrf.mxu0 }
  0xd8   : > { %580 = vst.msk [vmem:[#allocation2 + $0x80] sm:$0xff] %vm563_vm3, %v500_v58  ;;  %564 = vst.msk [vmem:[#allocation2] sm:$0xff] %vm563_vm3, %v436_v61 }
  0xd9   : > { %v2232_v60 = vpop.f32.mrf.mxu1  ;;  %v2216_v63 = vpop.f32.mrf.mxu0 }
  0xda   : > { %583 = vst.msk [vmem:[#allocation2 + $0x98] sm:$0xff] %vm563_vm3, %v2232_v60  ;;  %567 = vst.msk [vmem:[#allocation2 + $0x18] sm:$0xff] %vm563_vm3, %v2216_v63 }
  0xdb   : > { %v503_v62 = vpop.f32.mrf.mxu1  ;;  %v439_v1 = vpop.f32.mrf.mxu0 }
  0xdc   : > { %581 = vst.msk [vmem:[#allocation2 + $0x88] sm:$0xff] %vm563_vm3, %v503_v62  ;;  %565 = vst.msk [vmem:[#allocation2 + $0x8] sm:$0xff] %vm563_vm3, %v439_v1 }
  0xdd   : > { %v2235_v0 = vpop.f32.mrf.mxu1  ;;  %v2219_v3 = vpop.f32.mrf.mxu0  ;;  %v935_v25 = vld [vmem:[#allocation2 + $0x10] sm:$0xff] }
  0xde   : > { %586 = vst.msk [vmem:[#allocation2 + $0xb0] sm:$0xff] %vm563_vm3, %v2235_v0  ;;  %570 = vst.msk [vmem:[#allocation2 + $0x30] sm:$0xff] %vm563_vm3, %v2219_v3 }
  0xdf   : > { %v516_v2 = vpop.f32.mrf.mxu1  ;;  %v452_v5 = vpop.f32.mrf.mxu0  ;;  %v933_v29 = vld [vmem:[#allocation2] sm:$0xff] }
  0xe0   : > { %584 = vst.msk [vmem:[#allocation2 + $0xa0] sm:$0xff] %vm563_vm3, %v516_v2  ;;  %568 = vst.msk [vmem:[#allocation2 + $0x20] sm:$0xff] %vm563_vm3, %v452_v5 }
  0xe1   : > { %v2236_v4 = vpop.f32.mrf.mxu1  ;;  %v2220_v7 = vpop.f32.mrf.mxu0  ;;  %v936_v33 = vld [vmem:[#allocation2 + $0x18] sm:$0xff] }
  0xe2   : > { %587 = vst.msk [vmem:[#allocation2 + $0xb8] sm:$0xff] %vm563_vm3, %v2236_v4  ;;  %571 = vst.msk [vmem:[#allocation2 + $0x38] sm:$0xff] %vm563_vm3, %v2220_v7  ;;  %v2619_v4 = vld [vmem:[%s2878_s2] ss:$0 sm:$0xff] }
  0xe3   : > { %v519_v6 = vpop.f32.mrf.mxu1  ;;  %v455_v9 = vpop.f32.mrf.mxu0  ;;  %v934_v37 = vld [vmem:[#allocation2 + $0x8] sm:$0xff] }
  0xe4   : > { %585 = vst.msk [vmem:[#allocation2 + $0xa8] sm:$0xff] %vm563_vm3, %v519_v6  ;;  %569 = vst.msk [vmem:[#allocation2 + $0x28] sm:$0xff] %vm563_vm3, %v455_v9  ;;  %v2624_v9 = vld [vmem:[%s2879_s3] ss:$0 sm:$0xff] }
  0xe5   : > { %v2239_v8 = vpop.f32.mrf.mxu1  ;;  %v2223_v11 = vpop.f32.mrf.mxu0  ;;  %v939_v41 = vld [vmem:[#allocation2 + $0x30] sm:$0xff] }
  0xe6   : > { %590 = vst.msk [vmem:[#allocation2 + $0xd0] sm:$0xff] %vm563_vm3, %v2239_v8  ;;  %574 = vst.msk [vmem:[#allocation2 + $0x50] sm:$0xff] %vm563_vm3, %v2223_v11 }
  0xe7   : > { %v532_v10 = vpop.f32.mrf.mxu1  ;;  %v468_v13 = vpop.f32.mrf.mxu0  ;;  %v937_v46 = vld [vmem:[#allocation2 + $0x20] sm:$0xff] }
  0xe8   : > { %588 = vst.msk [vmem:[#allocation2 + $0xc0] sm:$0xff] %vm563_vm3, %v532_v10  ;;  %572 = vst.msk [vmem:[#allocation2 + $0x40] sm:$0xff] %vm563_vm3, %v468_v13 }
  0xe9   : > { %v2240_v12 = vpop.f32.mrf.mxu1  ;;  %v2224_v15 = vpop.f32.mrf.mxu0  ;;  %v940_v52 = vld [vmem:[#allocation2 + $0x38] sm:$0xff] }
  0xea   : > { %591 = vst.msk [vmem:[#allocation2 + $0xd8] sm:$0xff] %vm563_vm3, %v2240_v12  ;;  %575 = vst.msk [vmem:[#allocation2 + $0x58] sm:$0xff] %vm563_vm3, %v2224_v15 }
  0xeb   : > { %v535_v14 = vpop.f32.mrf.mxu1  ;;  %v471_v17 = vpop.f32.mrf.mxu0  ;;  %v938_v58 = vld [vmem:[#allocation2 + $0x28] sm:$0xff] }
  0xec   : > { %589 = vst.msk [vmem:[#allocation2 + $0xc8] sm:$0xff] %vm563_vm3, %v535_v14  ;;  %573 = vst.msk [vmem:[#allocation2 + $0x48] sm:$0xff] %vm563_vm3, %v471_v17 }
  0xed   : > { %v2243_v16 = vpop.f32.mrf.mxu1  ;;  %v2227_v19 = vpop.f32.mrf.mxu0  ;;  %v943_v0 = vld [vmem:[#allocation2 + $0x50] sm:$0xff] }
  0xee   : > { %594 = vst.msk [vmem:[#allocation2 + $0xf0] sm:$0xff] %vm563_vm3, %v2243_v16  ;;  %578 = vst.msk [vmem:[#allocation2 + $0x70] sm:$0xff] %vm563_vm3, %v2227_v19 }
  0xef   : > { %v548_v18 = vpop.f32.mrf.mxu1  ;;  %v484_v21 = vpop.f32.mrf.mxu0  ;;  %v941_v7 = vld [vmem:[#allocation2 + $0x40] sm:$0xff] }
  0xf0   : > { %592 = vst.msk [vmem:[#allocation2 + $0xe0] sm:$0xff] %vm563_vm3, %v548_v18  ;;  %576 = vst.msk [vmem:[#allocation2 + $0x60] sm:$0xff] %vm563_vm3, %v484_v21 }
  0xf1   : > { %v2244_v20 = vpop.f32.mrf.mxu1  ;;  %v2228_v23 = vpop.f32.mrf.mxu0  ;;  %v944_v15 = vld [vmem:[#allocation2 + $0x58] sm:$0xff] }
  0xf2   : > { %595 = vst.msk [vmem:[#allocation2 + $0xf8] sm:$0xff] %vm563_vm3, %v2244_v20  ;;  %579 = vst.msk [vmem:[#allocation2 + $0x78] sm:$0xff] %vm563_vm3, %v2228_v23 }
  0xf3   : > { %v551_v22 = vpop.f32.mrf.mxu1  ;;  %v487_v26 = vpop.f32.mrf.mxu0  ;;  %v942_v23 = vld [vmem:[#allocation2 + $0x48] sm:$0xff] }
  0xf4   : > { %593 = vst.msk [vmem:[#allocation2 + $0xe8] sm:$0xff] %vm563_vm3, %v551_v22  ;;  %577 = vst.msk [vmem:[#allocation2 + $0x68] sm:$0xff] %vm563_vm3, %v487_v26 }
  0xf5   : > { %v2249_v24 = vpop.f32.mrf.mxu1  ;;  %v2283_v30 = vpop.f32.mrf.mxu0 }
  0xf6   : > { %v967_v27 = vadd.f32 %v2249_v24, %v935_v25 }
  0xf7   : > { %v806_v28 = vpop.f32.mrf.mxu1  ;;  %v1239_v34 = vpop.f32.mrf.mxu0 }
  0xf8   : > { %999 = vst.msk [vmem:[#allocation2 + $0x10] sm:$0xff] %vm563_vm3, %v967_v27  ;;  %v965_v31 = vadd.f32 %v933_v29, %v806_v28 }
  0xf9   : > { %v2250_v32 = vpop.f32.mrf.mxu1  ;;  %v2284_v38 = vpop.f32.mrf.mxu0 }
  0xfa   : > { %997 = vst.msk [vmem:[#allocation2] sm:$0xff] %vm563_vm3, %v965_v31  ;;  %v968_v35 = vadd.f32 %v2250_v32, %v936_v33 }
  0xfb   : > { %v809_v36 = vpop.f32.mrf.mxu1  ;;  %v1242_v42 = vpop.f32.mrf.mxu0 }
  0xfc   : > { %1000 = vst.msk [vmem:[#allocation2 + $0x18] sm:$0xff] %vm563_vm3, %v968_v35  ;;  %v966_v39 = vadd.f32 %v934_v37, %v809_v36  ;;  %v947_v36 = vld [vmem:[#allocation2 + $0x70] sm:$0xff] }
  0xfd   : > { %v2253_v40 = vpop.f32.mrf.mxu1  ;;  %v2287_v47 = vpop.f32.mrf.mxu0 }
  0xfe   : > { %998 = vst.msk [vmem:[#allocation2 + $0x8] sm:$0xff] %vm563_vm3, %v966_v39  ;;  %v971_v43 = vadd.f32 %v2253_v40, %v939_v41 }
  0xff   : > { %v1368_v44 = vld [vmem:[#allocation2 + $0x10] sm:$0xff]  ;;  %v822_v45 = vpop.f32.mrf.mxu1  ;;  %v1255_v53 = vpop.f32.mrf.mxu0 }
 0x100   : > { %v1400_v48 = vadd.f32 %v2283_v30, %v1368_v44  ;;  %1003 = vst.msk [vmem:[#allocation2 + $0x30] sm:$0xff] %vm563_vm3, %v971_v43  ;;  %v969_v49 = vadd.f32 %v937_v46, %v822_v45  ;;  %v945_v46 = vld [vmem:[#allocation2 + $0x60] sm:$0xff] }
 0x101   : > { %v1366_v50 = vld [vmem:[#allocation2] sm:$0xff]  ;;  %v2254_v51 = vpop.f32.mrf.mxu1  ;;  %v2288_v59 = vpop.f32.mrf.mxu0 }
 0x102   : > { %1432 = vst.msk [vmem:[#allocation2 + $0x10] sm:$0xff] %vm563_vm3, %v1400_v48  ;;  %v1398_v54 = vadd.f32 %v1366_v50, %v1239_v34  ;;  %1001 = vst.msk [vmem:[#allocation2 + $0x20] sm:$0xff] %vm563_vm3, %v969_v49  ;;  %v972_v55 = vadd.f32 %v2254_v51, %v940_v52 }
 0x103   : > { %v1369_v56 = vld [vmem:[#allocation2 + $0x18] sm:$0xff]  ;;  %v825_v57 = vpop.f32.mrf.mxu1  ;;  %v1258_v1 = vpop.f32.mrf.mxu0 }
 0x104   : > { %1430 = vst.msk [vmem:[#allocation2] sm:$0xff] %vm563_vm3, %v1398_v54  ;;  %v1401_v60 = vadd.f32 %v2284_v38, %v1369_v56  ;;  %1004 = vst.msk [vmem:[#allocation2 + $0x38] sm:$0xff] %vm563_vm3, %v972_v55  ;;  %v970_v61 = vadd.f32 %v938_v58, %v825_v57  ;;  %v948_v58 = vld [vmem:[#allocation2 + $0x78] sm:$0xff] }
 0x105   : > { %v1367_v62 = vld [vmem:[#allocation2 + $0x8] sm:$0xff]  ;;  %v2257_v63 = vpop.f32.mrf.mxu1  ;;  %v2291_v8 = vpop.f32.mrf.mxu0 }
 0x106   : > { %1433 = vst.msk [vmem:[#allocation2 + $0x18] sm:$0xff] %vm563_vm3, %v1401_v60  ;;  %v1399_v2 = vadd.f32 %v1367_v62, %v1242_v42  ;;  %1002 = vst.msk [vmem:[#allocation2 + $0x28] sm:$0xff] %vm563_vm3, %v970_v61  ;;  %v975_v3 = vadd.f32 %v2257_v63, %v943_v0 }
 0x107   : > { %v1372_v5 = vld [vmem:[#allocation2 + $0x30] sm:$0xff]  ;;  %v838_v6 = vpop.f32.mrf.mxu1  ;;  %v1271_v16 = vpop.f32.mrf.mxu0 }
 0x108   : > { %1431 = vst.msk [vmem:[#allocation2 + $0x8] sm:$0xff] %vm563_vm3, %v1399_v2  ;;  %v1404_v10 = vadd.f32 %v2287_v47, %v1372_v5  ;;  %1007 = vst.msk [vmem:[#allocation2 + $0x50] sm:$0xff] %vm563_vm3, %v975_v3  ;;  %v973_v11 = vadd.f32 %v941_v7, %v838_v6 }
 0x109   : > { %v1464_v12 = vld [vmem:[#allocation2 + $0x10] sm:$0xff]  ;;  %v1370_v13 = vld [vmem:[#allocation2 + $0x20] sm:$0xff]  ;;  %v2258_v14 = vpop.f32.mrf.mxu1  ;;  %v2292_v24 = vpop.f32.mrf.mxu0 }
 0x10a   : > { %v1503_v17 = vmul.f32 %v2619_v4, %v1464_v12  ;;  %1436 = vst.msk [vmem:[#allocation2 + $0x30] sm:$0xff] %vm563_vm3, %v1404_v10  ;;  %v1402_v18 = vadd.f32 %v1370_v13, %v1255_v53  ;;  %1005 = vst.msk [vmem:[#allocation2 + $0x40] sm:$0xff] %vm563_vm3, %v973_v11  ;;  %v976_v19 = vadd.f32 %v2258_v14, %v944_v15 }
 0x10b   : > { %v1462_v20 = vld [vmem:[#allocation2] sm:$0xff]  ;;  %v1373_v21 = vld [vmem:[#allocation2 + $0x38] sm:$0xff]  ;;  %v841_v22 = vpop.f32.mrf.mxu1  ;;  %v2636_v32 = vpop.f32.mrf.mxu0 }
 0x10c   : > { %v1542_v25 = vadd.f32 %v2624_v9, %v1503_v17  ;;  %v1501_v26 = vmul.f32 %v2619_v4, %v1462_v20  ;;  %1434 = vst.msk [vmem:[#allocation2 + $0x20] sm:$0xff] %vm563_vm3, %v1402_v18  ;;  %v1405_v27 = vadd.f32 %v2288_v59, %v1373_v21  ;;  %1008 = vst.msk [vmem:[#allocation2 + $0x58] sm:$0xff] %vm563_vm3, %v976_v19  ;;  %v951_v20 = vld [vmem:[#allocation2 + $0x90] sm:$0xff] }
 0x10d   : > { %v974_v28 = vadd.f32 %v942_v23, %v841_v22  ;;  %v1465_v29 = vld [vmem:[#allocation2 + $0x18] sm:$0xff]  ;;  %v1371_v30 = vld [vmem:[#allocation2 + $0x28] sm:$0xff]  ;;  %v2261_v31 = vpop.f32.mrf.mxu1  ;;  %v2642_v42 = vpop.f32.mrf.mxu0 }
 0x10e   : > { %vm1574_vm4 = vcmp.ge.f32.partialorder %v1542_v25, 0.0  ;;  %v1606_v33 = vmul.f32 0.0, %v1542_v25  ;;  %v1540_v34 = vadd.f32 %v2624_v9, %v1501_v26  ;;  %v1504_v35 = vmul.f32 %v2619_v4, %v1465_v29  ;;  %1437 = vst.msk [vmem:[#allocation2 + $0x38] sm:$0xff] %vm563_vm3, %v1405_v27 }
 0x10f   : > { %1006 = vst.msk [vmem:[#allocation2 + $0x48] sm:$0xff] %vm563_vm3, %v974_v28  ;;  %v1463_v37 = vld [vmem:[#allocation2 + $0x8] sm:$0xff]  ;;  %v1403_v38 = vadd.f32 %v1371_v30, %v1258_v1  ;;  %v1376_v39 = vld [vmem:[#allocation2 + $0x50] sm:$0xff]  ;;  %v979_v40 = vadd.f32 %v2261_v31, %v947_v36  ;;  %v854_v41 = vpop.f32.mrf.mxu1  ;;  %v2653_v54 = vpop.f32.mrf.mxu0 }
 0x110   : > { %v1638_v43 = vsel %vm1574_vm4, %v1542_v25, %v1606_v33  ;;  %vm1572_vm6 = vcmp.ge.f32.partialorder %v1540_v34, 0.0  ;;  %v1604_v44 = vmul.f32 0.0, %v1540_v34  ;;  %v1543_v45 = vadd.f32 %v2624_v9, %v1504_v35  ;;  %v949_v35 = vld [vmem:[#allocation2 + $0x80] sm:$0xff] }
 0x111   : > { %v2130_v47 = vpack.c.bf16 %v1638_v43, %v1638_v43  ;;  %v1502_v48 = vmul.f32 %v2619_v4, %v1463_v37  ;;  %v1468_v49 = vld [vmem:[#allocation2 + $0x30] sm:$0xff]  ;;  %1435 = vst.msk [vmem:[#allocation2 + $0x28] sm:$0xff] %vm563_vm3, %v1403_v38  ;;  %v1408_v50 = vadd.f32 %v2291_v8, %v1376_v39  ;;  %v1374_v51 = vld [vmem:[#allocation2 + $0x40] sm:$0xff]  ;;  %1011 = vst.msk [vmem:[#allocation2 + $0x70] sm:$0xff] %vm563_vm3, %v979_v40  ;;  %v2262_v53 = vpop.f32.mrf.mxu1  ;;  %v2661_v2 = vpop.f32.mrf.mxu0 }
 0x112   : > { %v977_v52 = vadd.f32 %v945_v46, %v854_v41  ;;  %v1636_v55 = vsel %vm1572_vm6, %v1540_v34, %v1604_v44  ;;  %vm1575_vm7 = vcmp.ge.f32.partialorder %v1543_v45, 0.0  ;;  %v1607_v56 = vmul.f32 0.0, %v1543_v45  ;;  %v946_v8 = vld [vmem:[#allocation2 + $0x68] sm:$0xff]  ;;  %v952_v37 = vld [vmem:[#allocation2 + $0x98] sm:$0xff] }
 0x113   : > { %v1507_v57 = vmul.f32 %v2619_v4, %v1468_v49  ;;  %1799 = vst.msk [vmem:[%s2647_s10 + $0x8] sm:$0xf] %vm1796_vm5, %v2130_v47  ;;  %v2128_v59 = vpack.c.bf16 %v1636_v55, %v1636_v55  ;;  %v1541_v60 = vadd.f32 %v2624_v9, %v1502_v48  ;;  %v1466_v61 = vld [vmem:[#allocation2 + $0x20] sm:$0xff]  ;;  %v1406_v62 = vadd.f32 %v1374_v51, %v1271_v16  ;;  %v1377_v63 = vld [vmem:[#allocation2 + $0x58] sm:$0xff]  ;;  %v857_v1 = vpop.f32.mrf.mxu1  ;;  %v2669_v16 = vpop.f32.mrf.mxu0  ;;  %v950_v48 = vld [vmem:[#allocation2 + $0x88] sm:$0xff] }
 0x114   : > { %1440 = vst.msk [vmem:[#allocation2 + $0x50] sm:$0xff] %vm563_vm3, %v1408_v50  ;;  %1009 = vst.msk [vmem:[#allocation2 + $0x60] sm:$0xff] %vm563_vm3, %v977_v52  ;;  %v980_v0 = vadd.f32 %v2262_v53, %v948_v58  ;;  %v1639_v3 = vsel %vm1575_vm7, %v1543_v45, %v1607_v56  ;;  %v1505_v6 = vmul.f32 %v2619_v4, %v1466_v61 }
 0x115   : > { %v1546_v5 = vadd.f32 %v2624_v9, %v1507_v57  ;;  %v1409_v7 = vadd.f32 %v2292_v24, %v1377_v63  ;;  %1797 = vst.msk [vmem:[%s2647_s10] sm:$0xf] %vm1796_vm5, %v2128_v59  ;;  %v2131_v10 = vpack.c.bf16 %v1639_v3, %v1639_v3  ;;  %vm1573_vm8 = vcmp.ge.f32.partialorder %v1541_v60, 0.0  ;;  %v1469_v12 = vld [vmem:[#allocation2 + $0x38] sm:$0xff]  ;;  %v2265_v15 = vpop.f32.mrf.mxu1  ;;  %v2679_v25 = vpop.f32.mrf.mxu0  ;;  %v955_v3 = vld [vmem:[#allocation2 + $0xb0] sm:$0xff] }
 0x116   : > { %v1605_v11 = vmul.f32 0.0, %v1541_v60  ;;  %1438 = vst.msk [vmem:[#allocation2 + $0x40] sm:$0xff] %vm563_vm3, %v1406_v62  ;;  %v1375_v13 = vld [vmem:[#allocation2 + $0x48] sm:$0xff]  ;;  %1012 = vst.msk [vmem:[#allocation2 + $0x78] sm:$0xff] %vm563_vm3, %v980_v0  ;;  %v978_v14 = vadd.f32 %v946_v8, %v857_v1  ;;  %v1544_v18 = vadd.f32 %v2624_v9, %v1505_v6  ;;  %v1508_v19 = vmul.f32 %v2619_v4, %v1469_v12 }
 0x117   : > { %vm1578_vm9 = vcmp.ge.f32.partialorder %v1546_v5, 0.0  ;;  %v1610_v17 = vmul.f32 0.0, %v1546_v5  ;;  %1441 = vst.msk [vmem:[#allocation2 + $0x58] sm:$0xff] %vm563_vm3, %v1409_v7  ;;  %v1407_v22 = vadd.f32 %v1375_v13, %v2636_v32  ;;  %v983_v23 = vadd.f32 %v2265_v15, %v951_v20  ;;  %v870_v24 = vpop.f32.mrf.mxu1  ;;  %v2686_v38 = vpop.f32.mrf.mxu0 }
 0x118   : > { %1800 = vst.msk [vmem:[%s2647_s10 + $0xc] sm:$0xf] %vm1796_vm5, %v2131_v10  ;;  %v1637_v21 = vsel %vm1573_vm8, %v1541_v60, %v1605_v11  ;;  %vm1576_vm10 = vcmp.ge.f32.partialorder %v1544_v18, 0.0  ;;  %v1608_v28 = vmul.f32 0.0, %v1544_v18  ;;  %v1467_v29 = vld [vmem:[#allocation2 + $0x28] sm:$0xff]  ;;  %v1380_v30 = vld [vmem:[#allocation2 + $0x70] sm:$0xff]  ;;  %v1547_v33 = vadd.f32 %v2624_v9, %v1508_v19 }
 0x119   : > { %1010 = vst.msk [vmem:[#allocation2 + $0x68] sm:$0xff] %vm563_vm3, %v978_v14  ;;  %v2129_v26 = vpack.c.bf16 %v1637_v21, %v1637_v21  ;;  %v1642_v27 = vsel %vm1578_vm9, %v1546_v5, %v1610_v17  ;;  %v1506_v34 = vmul.f32 %v2619_v4, %v1467_v29  ;;  %1439 = vst.msk [vmem:[#allocation2 + $0x48] sm:$0xff] %vm563_vm3, %v1407_v22  ;;  %v2266_v36 = vpop.f32.mrf.mxu1  ;;  %v2694_v49 = vpop.f32.mrf.mxu0  ;;  %v953_v19 = vld [vmem:[#allocation2 + $0xa0] sm:$0xff] }
 0x11a   : > { %v2134_v31 = vpack.c.bf16 %v1642_v27, %v1642_v27  ;;  %v1412_v32 = vadd.f32 %v2642_v42, %v1380_v30  ;;  %1015 = vst.msk [vmem:[#allocation2 + $0x90] sm:$0xff] %vm563_vm3, %v983_v23  ;;  %v1640_v39 = vsel %vm1576_vm10, %v1544_v18, %v1608_v28  ;;  %v981_v43 = vadd.f32 %v949_v35, %v870_v24 }
 0x11b   : > { %1798 = vst.msk [vmem:[%s2647_s10 + $0x4] sm:$0xf] %vm1796_vm5, %v2129_v26  ;;  %v1472_v40 = vld [vmem:[#allocation2 + $0x50] sm:$0xff]  ;;  %v1378_v41 = vld [vmem:[#allocation2 + $0x60] sm:$0xff]  ;;  %v984_v44 = vadd.f32 %v2266_v36, %v952_v37  ;;  %v2132_v45 = vpack.c.bf16 %v1640_v39, %v1640_v39  ;;  %vm1579_vm11 = vcmp.ge.f32.partialorder %v1547_v33, 0.0  ;;  %v1611_v42 = vmul.f32 0.0, %v1547_v33  ;;  %v873_v47 = vpop.f32.mrf.mxu1  ;;  %v2703_v61 = vpop.f32.mrf.mxu0 }
 0x11c   : > { %1803 = vst.msk [vmem:[%s2647_s10 + $0x18] sm:$0xf] %vm1796_vm5, %v2134_v31  ;;  %v1545_v46 = vadd.f32 %v2624_v9, %v1506_v34  ;;  %v1511_v50 = vmul.f32 %v2619_v4, %v1472_v40  ;;  %v1410_v52 = vadd.f32 %v1378_v41, %v2653_v54  ;;  %v982_v55 = vadd.f32 %v950_v48, %v873_v47  ;;  %v956_v39 = vld [vmem:[#allocation2 + $0xb8] sm:$0xff] }
 0x11d   : > { %1444 = vst.msk [vmem:[#allocation2 + $0x70] sm:$0xff] %vm563_vm3, %v1412_v32  ;;  %v1470_v51 = vld [vmem:[#allocation2 + $0x40] sm:$0xff]  ;;  %v1381_v53 = vld [vmem:[#allocation2 + $0x78] sm:$0xff]  ;;  %1013 = vst.msk [vmem:[#allocation2 + $0x80] sm:$0xff] %vm563_vm3, %v981_v43  ;;  %v1643_v56 = vsel %vm1579_vm11, %v1547_v33, %v1611_v42  ;;  %v2269_v60 = vpop.f32.mrf.mxu1  ;;  %v2712_v11 = vpop.f32.mrf.mxu0 }
 0x11e   : > { %1016 = vst.msk [vmem:[#allocation2 + $0x98] sm:$0xff] %vm563_vm3, %v984_v44  ;;  %vm1577_vm12 = vcmp.ge.f32.partialorder %v1545_v46, 0.0  ;;  %v1609_v57 = vmul.f32 0.0, %v1545_v46  ;;  %v1509_v58 = vmul.f32 %v2619_v4, %v1470_v51  ;;  %v1473_v59 = vld [vmem:[#allocation2 + $0x58] sm:$0xff]  ;;  %v2135_v62 = vpack.c.bf16 %v1643_v56, %v1643_v56  ;;  %1442 = vst.msk [vmem:[#allocation2 + $0x60] sm:$0xff] %vm563_vm3, %v1410_v52  ;;  %v954_v42 = vld [vmem:[#allocation2 + $0xa8] sm:$0xff] }
 0x11f   : > { %1801 = vst.msk [vmem:[%s2647_s10 + $0x10] sm:$0xf] %vm1796_vm5, %v2132_v45  ;;  %v1550_v54 = vadd.f32 %v2624_v9, %v1511_v50  ;;  %v1512_v63 = vmul.f32 %v2619_v4, %v1473_v59  ;;  %v1413_v0 = vadd.f32 %v2661_v2, %v1381_v53  ;;  %v987_v8 = vadd.f32 %v2269_v60, %v955_v3  ;;  %v886_v10 = vpop.f32.mrf.mxu1  ;;  %v2722_v21 = vpop.f32.mrf.mxu0  ;;  %v959_v51 = vld [vmem:[#allocation2 + $0xd0] sm:$0xff] }
 0x120   : > { %v1379_v1 = vld [vmem:[#allocation2 + $0x68] sm:$0xff]  ;;  %1014 = vst.msk [vmem:[#allocation2 + $0x88] sm:$0xff] %vm563_vm3, %v982_v55  ;;  %v1641_v5 = vsel %vm1577_vm12, %v1545_v46, %v1609_v57  ;;  %v1548_v6 = vadd.f32 %v2624_v9, %v1509_v58  ;;  %v985_v26 = vadd.f32 %v953_v19, %v886_v10  ;;  %v957_v58 = vld [vmem:[#allocation2 + $0xc0] sm:$0xff] }
 0x121   : > { %v1411_v7 = vadd.f32 %v1379_v1, %v2669_v16  ;;  %1804 = vst.msk [vmem:[%s2647_s10 + $0x1c] sm:$0xf] %vm1796_vm5, %v2135_v62  ;;  %v2133_v12 = vpack.c.bf16 %v1641_v5, %v1641_v5  ;;  %vm1582_vm13 = vcmp.ge.f32.partialorder %v1550_v54, 0.0  ;;  %v1614_v13 = vmul.f32 0.0, %v1550_v54  ;;  %v1471_v14 = vld [vmem:[#allocation2 + $0x48] sm:$0xff]  ;;  %v1384_v15 = vld [vmem:[#allocation2 + $0x90] sm:$0xff]  ;;  %v2270_v20 = vpop.f32.mrf.mxu1  ;;  %v2731_v34 = vpop.f32.mrf.mxu0 }
 0x122   : > { %v1551_v2 = vadd.f32 %v2624_v9, %v1512_v63  ;;  %1445 = vst.msk [vmem:[#allocation2 + $0x78] sm:$0xff] %vm563_vm3, %v1413_v0  ;;  %vm1580_vm14 = vcmp.ge.f32.partialorder %v1548_v6, 0.0  ;;  %v1612_v17 = vmul.f32 0.0, %v1548_v6  ;;  %v1510_v16 = vmul.f32 %v2619_v4, %v1471_v14  ;;  %1019 = vst.msk [vmem:[#allocation2 + $0xb0] sm:$0xff] %vm563_vm3, %v987_v8 }
 0x123   : > { %1443 = vst.msk [vmem:[#allocation2 + $0x68] sm:$0xff] %vm563_vm3, %v1411_v7  ;;  %v1416_v18 = vadd.f32 %v2679_v25, %v1384_v15  ;;  %v1646_v22 = vsel %vm1582_vm13, %v1550_v54, %v1614_v13  ;;  %v889_v33 = vpop.f32.mrf.mxu1  ;;  %1017 = vst.msk [vmem:[#allocation2 + $0xa0] sm:$0xff] %vm563_vm3, %v985_v26  ;;  %v2739_v47 = vpop.f32.mrf.mxu0 }
 0x124   : > { %1802 = vst.msk [vmem:[%s2647_s10 + $0x14] sm:$0xf] %vm1796_vm5, %v2133_v12  ;;  %vm1583_vm15 = vcmp.ge.f32.partialorder %v1551_v2, 0.0  ;;  %v1615_v23 = vmul.f32 0.0, %v1551_v2  ;;  %v1476_v24 = vld [vmem:[#allocation2 + $0x70] sm:$0xff]  ;;  %v2138_v27 = vpack.c.bf16 %v1646_v22, %v1646_v22  ;;  %v1644_v28 = vsel %vm1580_vm14, %v1548_v6, %v1612_v17  ;;  %v1382_v30 = vld [vmem:[#allocation2 + $0x80] sm:$0xff] }
 0x125   : > { %v1549_v25 = vadd.f32 %v2624_v9, %v1510_v16  ;;  %v1515_v29 = vmul.f32 %v2619_v4, %v1476_v24  ;;  %1448 = vst.msk [vmem:[#allocation2 + $0x90] sm:$0xff] %vm563_vm3, %v1416_v18  ;;  %v1385_v31 = vld [vmem:[#allocation2 + $0x98] sm:$0xff]  ;;  %v2136_v32 = vpack.c.bf16 %v1644_v28, %v1644_v28  ;;  %v1414_v36 = vadd.f32 %v1382_v30, %v2686_v38  ;;  %v1474_v44 = vld [vmem:[#allocation2 + $0x60] sm:$0xff]  ;;  %v2273_v46 = vpop.f32.mrf.mxu1  ;;  %v2750_v59 = vpop.f32.mrf.mxu0 }
 0x126   : > { %v1647_v35 = vsel %vm1583_vm15, %v1551_v2, %v1615_v23  ;;  %v1417_v37 = vadd.f32 %v2694_v49, %v1385_v31  ;;  %1807 = vst.msk [vmem:[%s2647_s10 + $0x28] sm:$0xf] %vm1796_vm5, %v2138_v27  ;;  %v1513_v38 = vmul.f32 %v2619_v4, %v1474_v44  ;;  %v988_v49 = vadd.f32 %v2270_v20, %v956_v39  ;;  %v960_v2 = vld [vmem:[#allocation2 + $0xd8] sm:$0xff] }
 0x127   : > { %v2139_v40 = vpack.c.bf16 %v1647_v35, %v1647_v35  ;;  %vm1581_vm0 = vcmp.ge.f32.partialorder %v1549_v25, 0.0  ;;  %v1613_v41 = vmul.f32 0.0, %v1549_v25  ;;  %v1554_v43 = vadd.f32 %v2624_v9, %v1515_v29  ;;  %v1383_v45 = vld [vmem:[#allocation2 + $0x88] sm:$0xff]  ;;  %1805 = vst.msk [vmem:[%s2647_s10 + $0x20] sm:$0xf] %vm1796_vm5, %v2136_v32  ;;  %v902_v57 = vpop.f32.mrf.mxu1  ;;  %v2761_v7 = vpop.f32.mrf.mxu0 }
 0x128   : > { %1446 = vst.msk [vmem:[#allocation2 + $0x80] sm:$0xff] %vm563_vm3, %v1414_v36  ;;  %1449 = vst.msk [vmem:[#allocation2 + $0x98] sm:$0xff] %vm563_vm3, %v1417_v37  ;;  %v1415_v48 = vadd.f32 %v1383_v45, %v2703_v61  ;;  %v986_v50 = vadd.f32 %v954_v42, %v889_v33  ;;  %v991_v56 = vadd.f32 %v2273_v46, %v959_v51 }
 0x129   : > { %1808 = vst.msk [vmem:[%s2647_s10 + $0x2c] sm:$0xf] %vm1796_vm5, %v2139_v40  ;;  %v1645_v52 = vsel %vm1581_vm0, %v1549_v25, %v1613_v41  ;;  %vm1586_vm1 = vcmp.ge.f32.partialorder %v1554_v43, 0.0  ;;  %v1618_v53 = vmul.f32 0.0, %v1554_v43  ;;  %v1477_v55 = vld [vmem:[#allocation2 + $0x78] sm:$0xff]  ;;  %v1552_v62 = vadd.f32 %v2624_v9, %v1513_v38  ;;  %v1388_v63 = vld [vmem:[#allocation2 + $0xb0] sm:$0xff]  ;;  %v2274_v6 = vpop.f32.mrf.mxu1  ;;  %v2773_v22 = vpop.f32.mrf.mxu0 }
 0x12a   : > { %v2137_v60 = vpack.c.bf16 %v1645_v52, %v1645_v52  ;;  %v1516_v61 = vmul.f32 %v2619_v4, %v1477_v55  ;;  %v1475_v54 = vld [vmem:[#allocation2 + $0x68] sm:$0xff]  ;;  %1447 = vst.msk [vmem:[#allocation2 + $0x88] sm:$0xff] %vm563_vm3, %v1415_v48  ;;  %1020 = vst.msk [vmem:[#allocation2 + $0xb8] sm:$0xff] %vm563_vm3, %v988_v49  ;;  %v989_v0 = vadd.f32 %v957_v58, %v902_v57  ;;  %v1386_v15 = vld [vmem:[#allocation2 + $0xa0] sm:$0xff] }
 0x12b   : > { %1018 = vst.msk [vmem:[#allocation2 + $0xa8] sm:$0xff] %vm563_vm3, %v986_v50  ;;  %v1650_v1 = vsel %vm1586_vm1, %v1554_v43, %v1618_v53  ;;  %v1514_v3 = vmul.f32 %v2619_v4, %v1475_v54  ;;  %v1420_v5 = vadd.f32 %v2712_v11, %v1388_v63  ;;  %1023 = vst.msk [vmem:[#allocation2 + $0xd0] sm:$0xff] %vm563_vm3, %v991_v56  ;;  %vm1584_vm2 = vcmp.ge.f32.partialorder %v1552_v62, 0.0  ;;  %v905_v16 = vpop.f32.mrf.mxu1  ;;  %v958_v25 = vld [vmem:[#allocation2 + $0xc8] sm:$0xff]  ;;  %v1338_v38 = vpop.f32.mrf.mxu0 }
 0x12c   : > { %1806 = vst.msk [vmem:[%s2647_s10 + $0x24] sm:$0xf] %vm1796_vm5, %v2137_v60  ;;  %v2142_v8 = vpack.c.bf16 %v1650_v1, %v1650_v1  ;;  %v1616_v10 = vmul.f32 0.0, %v1552_v62  ;;  %v1555_v12 = vadd.f32 %v2624_v9, %v1516_v61  ;;  %v1480_v13 = vld [vmem:[#allocation2 + $0x90] sm:$0xff]  ;;  %v992_v17 = vadd.f32 %v2274_v6, %v960_v2  ;;  %v964_v61 = vld [vmem:[#allocation2 + $0xf8] sm:$0xff] }
 0x12d   : > { %1021 = vst.msk [vmem:[#allocation2 + $0xc0] sm:$0xff] %vm563_vm3, %v989_v0  ;;  %v1553_v14 = vadd.f32 %v2624_v9, %v1514_v3  ;;  %v1519_v11 = vmul.f32 %v2619_v4, %v1480_v13  ;;  %1452 = vst.msk [vmem:[#allocation2 + $0xb0] sm:$0xff] %vm563_vm3, %v1420_v5  ;;  %v1418_v20 = vadd.f32 %v1386_v15, %v2722_v21  ;;  %v2277_v29 = vpop.f32.mrf.mxu1  ;;  %v2311_v5 = vpop.f32.mrf.mxu0  ;;  %v962_v15 = vld [vmem:[#allocation2 + $0xe8] sm:$0xff] }
 0x12e   : > { %1811 = vst.msk [vmem:[%s2647_s10 + $0x38] sm:$0xf] %vm1796_vm5, %v2142_v8  ;;  %v1648_v18 = vsel %vm1584_vm2, %v1552_v62, %v1616_v10  ;;  %vm1587_vm4 = vcmp.ge.f32.partialorder %v1555_v12, 0.0  ;;  %v1619_v19 = vmul.f32 0.0, %v1555_v12  ;;  %v990_v21 = vadd.f32 %v958_v25, %v905_v16 }
 0x12f   : > { %v2140_v23 = vpack.c.bf16 %v1648_v18, %v1648_v18  ;;  %vm1585_vm6 = vcmp.ge.f32.partialorder %v1553_v14, 0.0  ;;  %v1617_v24 = vmul.f32 0.0, %v1553_v14  ;;  %v1558_v26 = vadd.f32 %v2624_v9, %v1519_v11  ;;  %v1478_v27 = vld [vmem:[#allocation2 + $0x80] sm:$0xff]  ;;  %v1481_v28 = vld [vmem:[#allocation2 + $0x98] sm:$0xff]  ;;  %1024 = vst.msk [vmem:[#allocation2 + $0xd8] sm:$0xff] %vm563_vm3, %v992_v17  ;;  %1450 = vst.msk [vmem:[#allocation2 + $0xa0] sm:$0xff] %vm563_vm3, %v1418_v20  ;;  %v918_v41 = vpop.f32.mrf.mxu1 }
 0x130   : > { %v1651_v30 = vsel %vm1587_vm4, %v1555_v12, %v1619_v19  ;;  %v1517_v31 = vmul.f32 %v2619_v4, %v1478_v27  ;;  %v1520_v33 = vmul.f32 %v2619_v4, %v1481_v28  ;;  %1022 = vst.msk [vmem:[#allocation2 + $0xc8] sm:$0xff] %vm563_vm3, %v990_v21 }
 0x131   : > { %1809 = vst.msk [vmem:[%s2647_s10 + $0x30] sm:$0xf] %vm1796_vm5, %v2140_v23  ;;  %v2143_v32 = vpack.c.bf16 %v1651_v30, %v1651_v30  ;;  %v1649_v35 = vsel %vm1585_vm6, %v1553_v14, %v1617_v24  ;;  %vm1590_vm7 = vcmp.ge.f32.partialorder %v1558_v26, 0.0  ;;  %v1622_v36 = vmul.f32 0.0, %v1558_v26  ;;  %v1479_v37 = vld [vmem:[#allocation2 + $0x88] sm:$0xff]  ;;  %v1389_v39 = vld [vmem:[#allocation2 + $0xb8] sm:$0xff]  ;;  %v2278_v53 = vpop.f32.mrf.mxu1 }
 0x132   : > { %v1387_v40 = vld [vmem:[#allocation2 + $0xa8] sm:$0xff]  ;;  %v2141_v43 = vpack.c.bf16 %v1649_v35, %v1649_v35  ;;  %v1556_v44 = vadd.f32 %v2624_v9, %v1517_v31  ;;  %v1559_v45 = vadd.f32 %v2624_v9, %v1520_v33  ;;  %v1518_v42 = vmul.f32 %v2619_v4, %v1479_v37  ;;  %v1392_v46 = vld [vmem:[#allocation2 + $0xd0] sm:$0xff] }
 0x133   : > { %1812 = vst.msk [vmem:[%s2647_s10 + $0x3c] sm:$0xf] %vm1796_vm5, %v2143_v32  ;;  %v1654_v48 = vsel %vm1590_vm7, %v1558_v26, %v1622_v36  ;;  %v1421_v49 = vadd.f32 %v2731_v34, %v1389_v39  ;;  %v1419_v50 = vadd.f32 %v1387_v40, %v2739_v47  ;;  %v1424_v51 = vadd.f32 %v2750_v59, %v1392_v46  ;;  %v963_v47 = vld [vmem:[#allocation2 + $0xf0] sm:$0xff]  ;;  %v961_v59 = vld [vmem:[#allocation2 + $0xe0] sm:$0xff]  ;;  %v921_v6 = vpop.f32.mrf.mxu1 }
 0x134   : > { %v1390_v52 = vld [vmem:[#allocation2 + $0xc0] sm:$0xff]  ;;  %1810 = vst.msk [vmem:[%s2647_s10 + $0x34] sm:$0xf] %vm1796_vm5, %v2141_v43  ;;  %v2146_v55 = vpack.c.bf16 %v1654_v48, %v1654_v48  ;;  %vm1588_vm8 = vcmp.ge.f32.partialorder %v1556_v44, 0.0  ;;  %v1620_v56 = vmul.f32 0.0, %v1556_v44  ;;  %vm1591_vm9 = vcmp.ge.f32.partialorder %v1559_v45, 0.0 }
 0x135   : > { %v1484_v57 = vld [vmem:[#allocation2 + $0xb0] sm:$0xff]  ;;  %v1623_v58 = vmul.f32 0.0, %v1559_v45  ;;  %v1557_v60 = vadd.f32 %v2624_v9, %v1518_v42  ;;  %1453 = vst.msk [vmem:[#allocation2 + $0xb8] sm:$0xff] %vm563_vm3, %v1421_v49  ;;  %1451 = vst.msk [vmem:[#allocation2 + $0xa8] sm:$0xff] %vm563_vm3, %v1419_v50  ;;  %v1422_v34 = vadd.f32 %v1390_v52, %v2761_v7  ;;  %v995_v63 = vadd.f32 %v2277_v29, %v963_v47 }
 0x136   : > { %v1523_v62 = vmul.f32 %v2619_v4, %v1484_v57  ;;  %1456 = vst.msk [vmem:[#allocation2 + $0xd0] sm:$0xff] %vm563_vm3, %v1424_v51  ;;  %v1652_v54 = vsel %vm1588_vm8, %v1556_v44, %v1620_v56  ;;  %v1393_v0 = vld [vmem:[#allocation2 + $0xd8] sm:$0xff]  ;;  %v993_v1 = vadd.f32 %v961_v59, %v918_v41  ;;  %v996_v3 = vadd.f32 %v2278_v53, %v964_v61  ;;  %v1482_v7 = vld [vmem:[#allocation2 + $0xa0] sm:$0xff] }
 0x137   : > { %1815 = vst.msk [vmem:[%s2647_s10 + $0x48] sm:$0xf] %vm1796_vm5, %v2146_v55  ;;  %v2144_v8 = vpack.c.bf16 %v1652_v54, %v1652_v54  ;;  %v1655_v10 = vsel %vm1591_vm9, %v1559_v45, %v1623_v58  ;;  %vm1589_vm10 = vcmp.ge.f32.partialorder %v1557_v60, 0.0  ;;  %v1621_v12 = vmul.f32 0.0, %v1557_v60  ;;  %v1391_v16 = vld [vmem:[#allocation2 + $0xc8] sm:$0xff] }
 0x138   : > { %1454 = vst.msk [vmem:[#allocation2 + $0xc0] sm:$0xff] %vm563_vm3, %v1422_v34  ;;  %v2147_v13 = vpack.c.bf16 %v1655_v10, %v1655_v10  ;;  %v1562_v2 = vadd.f32 %v2624_v9, %v1523_v62  ;;  %v1521_v14 = vmul.f32 %v2619_v4, %v1482_v7  ;;  %1027 = vst.msk [vmem:[#allocation2 + $0xf0] sm:$0xff] %vm563_vm3, %v995_v63 }
 0x139   : > { %v1425_v11 = vadd.f32 %v2773_v22, %v1393_v0  ;;  %1025 = vst.msk [vmem:[#allocation2 + $0xe0] sm:$0xff] %vm563_vm3, %v993_v1  ;;  %1028 = vst.msk [vmem:[#allocation2 + $0xf8] sm:$0xff] %vm563_vm3, %v996_v3  ;;  %v1653_v17 = vsel %vm1589_vm10, %v1557_v60, %v1621_v12  ;;  %v994_v18 = vadd.f32 %v962_v15, %v921_v6  ;;  %v1351_v22 = vpop.f32.mrf.mxu0 }
 0x13a   : > { %1813 = vst.msk [vmem:[%s2647_s10 + $0x40] sm:$0xf] %vm1796_vm5, %v2144_v8  ;;  %1816 = vst.msk [vmem:[%s2647_s10 + $0x4c] sm:$0xf] %vm1796_vm5, %v2147_v13  ;;  %v2145_v19 = vpack.c.bf16 %v1653_v17, %v1653_v17  ;;  %vm1594_vm11 = vcmp.ge.f32.partialorder %v1562_v2, 0.0  ;;  %v1626_v20 = vmul.f32 0.0, %v1562_v2  ;;  %v1560_v23 = vadd.f32 %v2624_v9, %v1521_v14 }
 0x13b   : > { %1457 = vst.msk [vmem:[#allocation2 + $0xd8] sm:$0xff] %vm563_vm3, %v1425_v11  ;;  %v1423_v24 = vadd.f32 %v1391_v16, %v1338_v38  ;;  %1026 = vst.msk [vmem:[#allocation2 + $0xe8] sm:$0xff] %vm563_vm3, %v994_v18  ;;  %v2312_v36 = vpop.f32.mrf.mxu0 }
 0x13c   : > { %1814 = vst.msk [vmem:[%s2647_s10 + $0x44] sm:$0xf] %vm1796_vm5, %v2145_v19  ;;  %v1658_v26 = vsel %vm1594_vm11, %v1562_v2, %v1626_v20  ;;  %vm1592_vm12 = vcmp.ge.f32.partialorder %v1560_v23, 0.0  ;;  %v1624_v27 = vmul.f32 0.0, %v1560_v23  ;;  %v1485_v28 = vld [vmem:[#allocation2 + $0xb8] sm:$0xff]  ;;  %v1483_v25 = vld [vmem:[#allocation2 + $0xa8] sm:$0xff] }
 0x13d   : > { %v1488_v29 = vld [vmem:[#allocation2 + $0xd0] sm:$0xff]  ;;  %v2150_v30 = vpack.c.bf16 %v1658_v26, %v1658_v26  ;;  %v1524_v31 = vmul.f32 %v2619_v4, %v1485_v28  ;;  %v1522_v33 = vmul.f32 %v2619_v4, %v1483_v25  ;;  %1455 = vst.msk [vmem:[#allocation2 + $0xc8] sm:$0xff] %vm563_vm3, %v1423_v24  ;;  %v1354_v56 = vpop.f32.mrf.mxu0 }
 0x13e   : > { %v1527_v21 = vmul.f32 %v2619_v4, %v1488_v29  ;;  %v1656_v32 = vsel %vm1592_vm12, %v1560_v23, %v1624_v27 }
 0x13f   : > { %v1486_v35 = vld [vmem:[#allocation2 + $0xc0] sm:$0xff]  ;;  %1819 = vst.msk [vmem:[%s2647_s10 + $0x58] sm:$0xf] %vm1796_vm5, %v2150_v30  ;;  %v2148_v37 = vpack.c.bf16 %v1656_v32, %v1656_v32  ;;  %v1563_v39 = vadd.f32 %v2624_v9, %v1524_v31  ;;  %v1561_v40 = vadd.f32 %v2624_v9, %v1522_v33  ;;  %v1396_v43 = vld [vmem:[#allocation2 + $0xf0] sm:$0xff] }
 0x140   : > { %v1566_v41 = vadd.f32 %v2624_v9, %v1527_v21  ;;  %v1394_v44 = vld [vmem:[#allocation2 + $0xe0] sm:$0xff]  ;;  %v1397_v45 = vld [vmem:[#allocation2 + $0xf8] sm:$0xff]  ;;  %v1525_v42 = vmul.f32 %v2619_v4, %v1486_v35  ;;  %v1428_v46 = vadd.f32 %v2311_v5, %v1396_v43 }
 0x141   : > { %v1426_v38 = vadd.f32 %v1394_v44, %v1351_v22  ;;  %v1429_v48 = vadd.f32 %v2312_v36, %v1397_v45  ;;  %1817 = vst.msk [vmem:[%s2647_s10 + $0x50] sm:$0xf] %vm1796_vm5, %v2148_v37  ;;  %vm1595_vm13 = vcmp.ge.f32.partialorder %v1563_v39, 0.0  ;;  %v1627_v49 = vmul.f32 0.0, %v1563_v39 }
 0x142   : > { %vm1593_vm14 = vcmp.ge.f32.partialorder %v1561_v40, 0.0  ;;  %v1625_v50 = vmul.f32 0.0, %v1561_v40  ;;  %v1489_v51 = vld [vmem:[#allocation2 + $0xd8] sm:$0xff]  ;;  %vm1598_vm15 = vcmp.ge.f32.partialorder %v1566_v41, 0.0  ;;  %v1630_v52 = vmul.f32 0.0, %v1566_v41  ;;  %1460 = vst.msk [vmem:[#allocation2 + $0xf0] sm:$0xff] %vm563_vm3, %v1428_v46 }
 0x143   : > { %v1564_v53 = vadd.f32 %v2624_v9, %v1525_v42  ;;  %v1528_v55 = vmul.f32 %v2619_v4, %v1489_v51  ;;  %1458 = vst.msk [vmem:[#allocation2 + $0xe0] sm:$0xff] %vm563_vm3, %v1426_v38  ;;  %1461 = vst.msk [vmem:[#allocation2 + $0xf8] sm:$0xff] %vm563_vm3, %v1429_v48  ;;  %v1395_v57 = vld [vmem:[#allocation2 + $0xe8] sm:$0xff]  ;;  %v1659_v58 = vsel %vm1595_vm13, %v1563_v39, %v1627_v49 }
 0x144   : > { %v1657_v60 = vsel %vm1593_vm14, %v1561_v40, %v1625_v50  ;;  %v1427_v62 = vadd.f32 %v1395_v57, %v1354_v56  ;;  %v2151_v34 = vpack.c.bf16 %v1659_v58, %v1659_v58  ;;  %v1662_v59 = vsel %vm1598_vm15, %v1566_v41, %v1630_v52  ;;  %v1487_v61 = vld [vmem:[#allocation2 + $0xc8] sm:$0xff] }
 0x145   : > { %v2149_v47 = vpack.c.bf16 %v1657_v60, %v1657_v60  ;;  %vm1596_vm0 = vcmp.ge.f32.partialorder %v1564_v53, 0.0  ;;  %v2154_v54 = vpack.c.bf16 %v1662_v59, %v1662_v59  ;;  %v1628_v63 = vmul.f32 0.0, %v1564_v53 }
 0x146   : > { %v1567_v0 = vadd.f32 %v2624_v9, %v1528_v55  ;;  %v1526_v1 = vmul.f32 %v2619_v4, %v1487_v61  ;;  %1459 = vst.msk [vmem:[#allocation2 + $0xe8] sm:$0xff] %vm563_vm3, %v1427_v62 }
 0x147   : > { %1820 = vst.msk [vmem:[%s2647_s10 + $0x5c] sm:$0xf] %vm1796_vm5, %v2151_v34  ;;  %1818 = vst.msk [vmem:[%s2647_s10 + $0x54] sm:$0xf] %vm1796_vm5, %v2149_v47  ;;  %v1660_v3 = vsel %vm1596_vm0, %v1564_v53, %v1628_v63 }
 0x148   : > { %1823 = vst.msk [vmem:[%s2647_s10 + $0x68] sm:$0xf] %vm1796_vm5, %v2154_v54  ;;  %vm1599_vm1 = vcmp.ge.f32.partialorder %v1567_v0, 0.0  ;;  %v1631_v5 = vmul.f32 0.0, %v1567_v0  ;;  %v1565_v6 = vadd.f32 %v2624_v9, %v1526_v1  ;;  %v2152_v8 = vpack.c.bf16 %v1660_v3, %v1660_v3 }
 0x149   : > { %v1492_v7 = vld [vmem:[#allocation2 + $0xf0] sm:$0xff] }
 0x14a   : > { %v1663_v10 = vsel %vm1599_vm1, %v1567_v0, %v1631_v5  ;;  %vm1597_vm2 = vcmp.ge.f32.partialorder %v1565_v6, 0.0  ;;  %v1629_v12 = vmul.f32 0.0, %v1565_v6  ;;  %v1490_v13 = vld [vmem:[#allocation2 + $0xe0] sm:$0xff]  ;;  %v1493_v2 = vld [vmem:[#allocation2 + $0xf8] sm:$0xff]  ;;  %1821 = vst.msk [vmem:[%s2647_s10 + $0x60] sm:$0xf] %vm1796_vm5, %v2152_v8  ;;  %v1531_v11 = vmul.f32 %v2619_v4, %v1492_v7 }
 0x14b   : > { %v2155_v14 = vpack.c.bf16 %v1663_v10, %v1663_v10  ;;  %v1529_v15 = vmul.f32 %v2619_v4, %v1490_v13  ;;  %v1532_v17 = vmul.f32 %v2619_v4, %v1493_v2 }
 0x14c   : > { %v1661_v16 = vsel %vm1597_vm2, %v1565_v6, %v1629_v12  ;;  %v1570_v19 = vadd.f32 %v2624_v9, %v1531_v11 }
 0x14d   : > { %1824 = vst.msk [vmem:[%s2647_s10 + $0x6c] sm:$0xf] %vm1796_vm5, %v2155_v14  ;;  %v2153_v18 = vpack.c.bf16 %v1661_v16, %v1661_v16  ;;  %v1568_v20 = vadd.f32 %v2624_v9, %v1529_v15  ;;  %v1571_v23 = vadd.f32 %v2624_v9, %v1532_v17  ;;  %v1491_v22 = vld [vmem:[#allocation2 + $0xe8] sm:$0xff] }
 0x14e   : > { %v1530_v24 = vmul.f32 %v2619_v4, %v1491_v22  ;;  %vm1602_vm3 = vcmp.ge.f32.partialorder %v1570_v19, 0.0  ;;  %v1634_v26 = vmul.f32 0.0, %v1570_v19 }
 0x14f   : > { %1822 = vst.msk [vmem:[%s2647_s10 + $0x64] sm:$0xf] %vm1796_vm5, %v2153_v18  ;;  %vm1600_vm4 = vcmp.ge.f32.partialorder %v1568_v20, 0.0  ;;  %v1632_v27 = vmul.f32 0.0, %v1568_v20  ;;  %vm1603_vm6 = vcmp.ge.f32.partialorder %v1571_v23, 0.0  ;;  %v1635_v28 = vmul.f32 0.0, %v1571_v23 }
 0x150   : > { %v1569_v25 = vadd.f32 %v2624_v9, %v1530_v24  ;;  %v1666_v29 = vsel %vm1602_vm3, %v1570_v19, %v1634_v26 }
 0x151   : > { %v1664_v30 = vsel %vm1600_vm4, %v1568_v20, %v1632_v27  ;;  %v2158_v31 = vpack.c.bf16 %v1666_v29, %v1666_v29  ;;  %v1667_v21 = vsel %vm1603_vm6, %v1571_v23, %v1635_v28 }
 0x152   : > { %v2156_v33 = vpack.c.bf16 %v1664_v30, %v1664_v30  ;;  %vm1601_vm7 = vcmp.ge.f32.partialorder %v1569_v25, 0.0  ;;  %v2159_v4 = vpack.c.bf16 %v1667_v21, %v1667_v21  ;;  %v1633_v32 = vmul.f32 0.0, %v1569_v25 }
 0x153   : > { %1827 = vst.msk [vmem:[%s2647_s10 + $0x78] sm:$0xf] %vm1796_vm5, %v2158_v31 }
 0x154   : > { %1825 = vst.msk [vmem:[%s2647_s10 + $0x70] sm:$0xf] %vm1796_vm5, %v2156_v33  ;;  %1828 = vst.msk [vmem:[%s2647_s10 + $0x7c] sm:$0xf] %vm1796_vm5, %v2159_v4  ;;  %v1665_v35 = vsel %vm1601_vm7, %v1569_v25, %v1633_v32 }
 0x155   : > { %v2157_v36 = vpack.c.bf16 %v1665_v35, %v1665_v35 }
 0x157   : > { %1826 = vst.msk [vmem:[%s2647_s10 + $0x74] sm:$0xf] %vm1796_vm5, %v2157_v36 }
 0x158 PF: > { %s14_s17 = sadd.s32 1, %s2414_s17   ;;  %s2881_s15 = smov %s2410_s16 }
 0x159   : > { %p11_p5 = scmp.ge.s32.totalorder %s14_s17, 4   ;;  %s2882_s16 = smov %s2884_s18 }
 0x15b   :  { %13 = sbr.rel (!%p11_p5) target bundleno = 2 (0x2), region = 71 }

</bundles_post_ra>
